<compile_context>
chip_gen: v7x
topology: tpu7x:2x2x1
jax: 0.10.0
libtpu: 0.0.40
codegen_flags: <defaults>
</compile_context>

<pallas_src>
import functools

import jax
import jax.numpy as jnp
from jax.experimental import pallas as pl
from jax.experimental.pallas import tpu as pltpu


def _round_up(x, m):
    return (x + m - 1) // m * m


def _pick_tk(Kp, max_tk=8192):
    """tk == Kp whenever it fits (collapses the K grid axis to one step);
    otherwise the largest multiple-of-128 divisor of Kp that is <= max_tk."""
    if Kp <= max_tk:
        return Kp
    nk = Kp // 128
    best = 1
    for d in range(1, nk + 1):
        if nk % d == 0 and d * 128 <= max_tk:
            best = d
    return best * 128


# -----------------------------------------------------------------------------
# Fused matmul kernels.
#   out = maybe_relu((x @ w) + bias [+ residual])
# x/w/residual are bf16, accumulation is f32 in a VMEM scratch, output is bf16.
# Grid = (M tiles, N tiles, K tiles); K is the innermost (arbitrary) axis and
# usually has extent 1 because tk == Kp.
# -----------------------------------------------------------------------------
def _mm_bias_kernel(x_ref, w_ref, b_ref, o_ref, acc_ref, *, relu):
    k = pl.program_id(2)

    @pl.when(k == 0)
    def _():
        # init accumulator with the broadcast bias (saves an epilogue add pass)
        acc_ref[...] = jnp.broadcast_to(b_ref[...], acc_ref.shape)

    acc_ref[...] += jnp.dot(x_ref[...], w_ref[...],
                            preferred_element_type=jnp.float32)

    @pl.when(k == pl.num_programs(2) - 1)
    def _():
        out = acc_ref[...]
        if relu:
            out = jnp.maximum(out, 0.0)
        o_ref[...] = out.astype(o_ref.dtype)


def _mm_bias_res_kernel(x_ref, w_ref, b_ref, r_ref, o_ref, acc_ref, *, relu):
    k = pl.program_id(2)

    @pl.when(k == 0)
    def _():
        acc_ref[...] = jnp.broadcast_to(b_ref[...], acc_ref.shape)

    acc_ref[...] += jnp.dot(x_ref[...], w_ref[...],
                            preferred_element_type=jnp.float32)

    @pl.when(k == pl.num_programs(2) - 1)
    def _():
        out = acc_ref[...] + r_ref[...].astype(jnp.float32)   # bf16 residual, f32 add
        if relu:
            out = jnp.maximum(out, 0.0)
        o_ref[...] = out.astype(o_ref.dtype)


_PALLAS_MIN_M = 128   # below this the MXU is mostly idle; pallas_call overhead dominates


def fused_matmul(x, w, bias, residual=None, relu=False):
    """maybe_relu(x:(M,K) @ w:(K,N) + bias[N] [+ residual:(M,N)]).  Returns bf16 (M,N)."""
    M, K = x.shape
    N = w.shape[1]

    # --- small-M layers: plain XLA (still bf16 MXU operands, f32 accumulation) ---
    if M < _PALLAS_MIN_M:
        out = jnp.dot(x.astype(jnp.bfloat16), w.astype(jnp.bfloat16),
                      preferred_element_type=jnp.float32) + bias.astype(jnp.float32)
        if residual is not None:
            out = out + residual.astype(jnp.float32)
        if relu:
            out = jnp.maximum(out, 0.0)
        return out.astype(jnp.bfloat16)

    # --- tile-size selection ---
    Mp = _round_up(M, 16)
    tm = min(Mp, 256)
    Mp = _round_up(Mp, tm)
    Np = _round_up(N, 128)
    tn = min(Np, 256)
    Np = _round_up(Np, tn)
    Kp = _round_up(K, 128)
    tk = _pick_tk(Kp)

    # Guarantee a >=2-extent *parallel* grid axis (v7x megacore) by splitting M
    # when both the M and N grids would otherwise be single-tile.
    if Mp // tm == 1 and Np // tn == 1 and Mp >= 32:
        tm = Mp // 2      # Mp is a multiple of 16 -> tm stays a multiple of 8

    # bf16 operands for the MXU; accumulation stays f32 inside the kernel.
    xp = jnp.pad(x, ((0, Mp - M), (0, Kp - K))).astype(jnp.bfloat16)
    wp = jnp.pad(w, ((0, Kp - K), (0, Np - N))).astype(jnp.bfloat16)
    bp = jnp.pad(bias.astype(jnp.float32), (0, Np - N)).reshape(1, Np)

    x_spec = pl.BlockSpec((tm, tk), lambda i, j, k: (i, k))
    w_spec = pl.BlockSpec((tk, tn), lambda i, j, k: (k, j))
    b_spec = pl.BlockSpec((1, tn), lambda i, j, k: (0, j))
    o_spec = pl.BlockSpec((tm, tn), lambda i, j, k: (i, j))

    if residual is None:
        kernel = functools.partial(_mm_bias_kernel, relu=relu)
        in_specs = [x_spec, w_spec, b_spec]
        args = (xp, wp, bp)
    else:
        rp = jnp.pad(residual.astype(jnp.bfloat16), ((0, Mp - M), (0, Np - N)))
        kernel = functools.partial(_mm_bias_res_kernel, relu=relu)
        in_specs = [x_spec, w_spec, b_spec,
                    pl.BlockSpec((tm, tn), lambda i, j, k: (i, j))]
        args = (xp, wp, bp, rp)

    out = pl.pallas_call(
        kernel,
        out_shape=jax.ShapeDtypeStruct((Mp, Np), jnp.bfloat16),
        grid_spec=pltpu.PrefetchScalarGridSpec(
            num_scalar_prefetch=0,
            grid=(Mp // tm, Np // tn, Kp // tk),
            in_specs=in_specs,
            out_specs=o_spec,
            scratch_shapes=[pltpu.VMEM((tm, tn), jnp.float32)],
        ),
        compiler_params=pltpu.CompilerParams(
            dimension_semantics=("parallel", "parallel", "arbitrary"),
            vmem_limit_bytes=32 * 1024 * 1024,
        ),
    )(*args)
    return out[:M, :N]


# -----------------------------------------------------------------------------
# Max-pool: tiny elementwise op -> fused XLA maximum-chain (a pallas_call with a
# (9,M,C) stacked input costs far more than the op itself).
# -----------------------------------------------------------------------------
def maxpool2d_nhwc(x, ksize=3, stride=2, pad=1):
    N, H, W, C = x.shape
    xp = jnp.pad(x, ((0, 0), (pad, pad), (pad, pad), (0, 0)),
                 constant_values=-jnp.inf)
    Ho = (H + 2 * pad - ksize) // stride + 1
    Wo = (W + 2 * pad - ksize) // stride + 1
    out = None
    for i in range(ksize):
        for j in range(ksize):
            tap = xp[:, i:i + stride * Ho:stride, j:j + stride * Wo:stride, :]
            out = tap if out is None else jnp.maximum(out, tap)
    return out


# -----------------------------------------------------------------------------
# Conv + folded-BN (+ residual, + ReLU) via im2col (bf16) + fused Pallas matmul.
# -----------------------------------------------------------------------------
def _im2col_nhwc(x, kh, kw, stride, pad):
    N, H, W, C = x.shape
    xp = jnp.pad(x, ((0, 0), (pad, pad), (pad, pad), (0, 0)))
    Ho = (H + 2 * pad - kh) // stride + 1
    Wo = (W + 2 * pad - kw) // stride + 1
    cols = []
    for i in range(kh):
        for j in range(kw):
            cols.append(xp[:, i:i + stride * Ho:stride,
                           j:j + stride * Wo:stride, :])
    p = jnp.stack(cols, axis=3)  # (N, Ho, Wo, kh*kw, C)
    return p.reshape(N * Ho * Wo, kh * kw * C), Ho, Wo


def conv_bn(x, w, bn, stride, pad, relu, residual=None):
    """x: (N,H,W,Cin) NHWC bf16.  w: (Cout,Cin,kh,kw) (PyTorch layout).  bn=(gamma,beta,mean,var)."""
    Cout, Cin, kh, kw = w.shape
    N = x.shape[0]
    patches, Ho, Wo = _im2col_nhwc(x, kh, kw, stride, pad)
    gamma, beta, mean, var = bn
    scale = gamma / jnp.sqrt(var + 1e-5)          # BN (eval mode) folded into the weights
    bias = beta - mean * scale
    wmat = (jnp.transpose(w, (2, 3, 1, 0)).reshape(kh * kw * Cin, Cout)
            * scale[None, :])
    res = None if residual is None else residual.reshape(N * Ho * Wo, Cout)
    out = fused_matmul(patches, wmat, bias, residual=res, relu=relu)
    return out.reshape(N, Ho, Wo, Cout)


def basic_block(x, blk, stride):
    identity = x
    out = conv_bn(x, blk['conv1'], blk['bn1'], stride=stride, pad=1, relu=True)
    if 'down_conv' in blk:
        identity = conv_bn(x, blk['down_conv'], blk['down_bn'],
                           stride=stride, pad=0, relu=False)
    # second conv: BN bias + residual add + ReLU fused into the same matmul
    out = conv_bn(out, blk['conv2'], blk['bn2'], stride=1, pad=1,
                  relu=True, residual=identity)
    return out


# -----------------------------------------------------------------------------
# Deterministic parameter initialization (synthetic; no checkpoint loading).
# Strides are static architecture config (not part of the jitted pytree).
# -----------------------------------------------------------------------------
STAGE_CFG = ((64, 1), (128, 2), (256, 2), (512, 2))   # (channels, first-block stride)


class KeyGen:
    def __init__(self, key):
        self.key = key

    def __call__(self):
        self.key, sub = jax.random.split(self.key)
        return sub


def init_resnet18_classifier_params(kg, num_classes=10):
    def conv(cout, cin, k):
        fan_in = cin * k * k
        return jax.random.normal(kg(), (cout, cin, k, k), jnp.float32) * jnp.sqrt(2.0 / fan_in)

    def bn(c):
        gamma = 1.0 + 0.1 * jax.random.normal(kg(), (c,), jnp.float32)
        beta = 0.1 * jax.random.normal(kg(), (c,), jnp.float32)
        mean = 0.1 * jax.random.normal(kg(), (c,), jnp.float32)
        var = jax.random.uniform(kg(), (c,), jnp.float32, 0.5, 1.5)
        return (gamma, beta, mean, var)

    params = {'conv1': conv(64, 3, 7), 'bn1': bn(64)}
    in_c = 64
    layers = []
    for out_c, stride in STAGE_CFG:
        blocks = []
        for b in range(2):                          # ResNet-18: 2 BasicBlocks per stage
            s = stride if b == 0 else 1
            blk = {'conv1': conv(out_c, in_c, 3), 'bn1': bn(out_c),
                   'conv2': conv(out_c, out_c, 3), 'bn2': bn(out_c)}
            if s != 1 or in_c != out_c:
                blk['down_conv'] = conv(out_c, in_c, 1)
                blk['down_bn'] = bn(out_c)
            blocks.append(blk)
            in_c = out_c
        layers.append(blocks)
    params['layers'] = layers
    # decoder: nn.Linear(embed_dim * expansion = 512, num_classes)
    params['fc_w'] = jax.random.normal(kg(), (num_classes, 512), jnp.float32) / jnp.sqrt(512.0)
    params['fc_b'] = 0.01 * jax.random.normal(kg(), (num_classes,), jnp.float32)
    return params


# -----------------------------------------------------------------------------
# Forward pass  (encoder -> check_manifold (identity) -> decoder)
# -----------------------------------------------------------------------------
@jax.jit
def resnet_classifier_forward(params, x_nchw):
    x = jnp.transpose(x_nchw, (0, 2, 3, 1)).astype(jnp.bfloat16)   # NCHW -> NHWC bf16
    # --- encoder: resnet18(remove_linear=True) ---
    x = conv_bn(x, params['conv1'], params['bn1'], stride=2, pad=3, relu=True)
    x = maxpool2d_nhwc(x, ksize=3, stride=2, pad=1)
    for stage_idx, blocks in enumerate(params['layers']):
        for b, blk in enumerate(blocks):
            stride = STAGE_CFG[stage_idx][1] if b == 0 else 1
            x = basic_block(x, blk, stride)
    feat = jnp.mean(x.astype(jnp.float32), axis=(1, 2))   # adaptive avg-pool + flatten -> (N,512) f32
    # --- check_manifold: euclidean -> euclidean is a pass-through ---
    # --- decoder: nn.Linear(512, num_classes). M<=batch, N=10: too small for a
    #     worthwhile pallas_call -> plain XLA matmul. ---
    logits = feat @ params['fc_w'].T + params['fc_b']
    return logits


if __name__ == "__main__":
    kg = KeyGen(jax.random.PRNGKey(0))
    params = init_resnet18_classifier_params(kg, num_classes=10)
    x = jax.random.normal(jax.random.PRNGKey(0), (2, 3, 32, 32), jnp.float32)
    logits = resnet_classifier_forward(params, x)
    jax.block_until_ready(logits)
    assert logits.shape == (2, 10) and logits.dtype == jnp.float32
    print("KERNEL_OK")
</pallas_src>

<mosaic_0001>
module attributes {stable_mosaic.version = 11 : i64} {
  func.func @_mm_bias_kernel(%arg0: i32, %arg1: i32, %arg2: i32, %arg3: memref<256x256xbf16, #tpu.memory_space<vmem>>, %arg4: memref<256x128xbf16, #tpu.memory_space<vmem>>, %arg5: memref<1x128xf32, #tpu.memory_space<vmem>>, %arg6: memref<256x128xbf16, #tpu.memory_space<vmem>>, %arg7: memref<256x128xf32, #tpu.memory_space<vmem>>) attributes {dimension_semantics = [#tpu.dimension_semantics<parallel>, #tpu.dimension_semantics<parallel>, #tpu.dimension_semantics<arbitrary>], iteration_bounds = array<i64: 2, 1, 1>, scalar_prefetch = 0 : i64, scratch_operands = 1 : i64, tpu.core_type = #tpu.core_type<tc>, window_params = [{transform_indices = @transform_0, window_bounds = array<i64: 256, 256>}, {transform_indices = @transform_1, window_bounds = array<i64: 256, 128>}, {transform_indices = @transform_2, window_bounds = array<i64: 1, 128>}, {transform_indices = @transform_3, window_bounds = array<i64: 256, 128>}]} {
    %c0_i32 = arith.constant 0 : i32
    %0 = arith.cmpi eq, %arg2, %c0_i32 : i32
    %1 = arith.extui %0 : i1 to i32
    %c0_i32_0 = arith.constant 0 : i32
    %2 = arith.cmpi ne, %1, %c0_i32_0 : i32
    scf.if %2 {
      %c0_10 = arith.constant 0 : index
      %c0_11 = arith.constant 0 : index
      %12 = vector.load %arg5[%c0_10, %c0_11] : memref<1x128xf32, #tpu.memory_space<vmem>>, vector<1x128xf32>
      %13 = vector.shape_cast %12 : vector<1x128xf32> to vector<1x128xf32>
      %14 = vector.broadcast %13 : vector<1x128xf32> to vector<256x128xf32>
      %c0_12 = arith.constant 0 : index
      %c0_13 = arith.constant 0 : index
      %15 = vector.load %arg7[%c0_12, %c0_13] : memref<256x128xf32, #tpu.memory_space<vmem>>, vector<256x128xf32>
      tpu.vector_store %arg7[%c0_12, %c0_13], %14 {strides = array<i32>} : memref<256x128xf32, #tpu.memory_space<vmem>>, vector<256x128xf32>,
    } else {
    }
    %c0 = arith.constant 0 : index
    %c0_1 = arith.constant 0 : index
    %3 = vector.load %arg7[%c0, %c0_1] : memref<256x128xf32, #tpu.memory_space<vmem>>, vector<256x128xf32>
    %c0_2 = arith.constant 0 : index
    %c0_3 = arith.constant 0 : index
    %4 = vector.load %arg3[%c0_2, %c0_3] : memref<256x256xbf16, #tpu.memory_space<vmem>>, vector<256x256xbf16>
    %c0_4 = arith.constant 0 : index
    %c0_5 = arith.constant 0 : index
    %5 = vector.load %arg4[%c0_4, %c0_5] : memref<256x128xbf16, #tpu.memory_space<vmem>>, vector<256x128xbf16>
    %cst = arith.constant dense<0.000000e+00> : vector<256x128xf32>
    %6 = tpu.matmul %4, %5, %cst {dimension_numbers = #tpu.dot_dimension_numbers<[1], [0], [0], [1], [0, 0, 1, 1], [], []>} : vector<256x256xbf16>, vector<256x128xbf16>, vector<256x128xf32> -> vector<256x128xf32>
    %7 = arith.addf %3, %6 : vector<256x128xf32>
    %c0_6 = arith.constant 0 : index
    %c0_7 = arith.constant 0 : index
    %8 = vector.load %arg7[%c0_6, %c0_7] : memref<256x128xf32, #tpu.memory_space<vmem>>, vector<256x128xf32>
    tpu.vector_store %arg7[%c0_6, %c0_7], %7 {strides = array<i32>} : memref<256x128xf32, #tpu.memory_space<vmem>>, vector<256x128xf32>,
    %c0_i32_8 = arith.constant 0 : i32
    %9 = arith.cmpi eq, %arg2, %c0_i32_8 : i32
    %10 = arith.extui %9 : i1 to i32
    %c0_i32_9 = arith.constant 0 : i32
    %11 = arith.cmpi ne, %10, %c0_i32_9 : i32
    scf.if %11 {
      %c0_10 = arith.constant 0 : index
      %c0_11 = arith.constant 0 : index
      %12 = vector.load %arg7[%c0_10, %c0_11] : memref<256x128xf32, #tpu.memory_space<vmem>>, vector<256x128xf32>
      %cst_12 = arith.constant 0.000000e+00 : f32
      %13 = vector.broadcast %cst_12 : f32 to vector<256x128xf32>
      %14 = arith.maximumf %12, %13 : vector<256x128xf32>
      %15 = arith.truncf %14 : vector<256x128xf32> to vector<256x128xbf16>
      %c0_13 = arith.constant 0 : index
      %c0_14 = arith.constant 0 : index
      %16 = vector.load %arg6[%c0_13, %c0_14] : memref<256x128xbf16, #tpu.memory_space<vmem>>, vector<256x128xbf16>
      tpu.vector_store %arg6[%c0_13, %c0_14], %15 {strides = array<i32>} : memref<256x128xbf16, #tpu.memory_space<vmem>>, vector<256x128xbf16>,
    } else {
    }
    return
  }
  func.func @transform_0(%arg0: i32, %arg1: i32, %arg2: i32) -> (i32, i32) {
    %c0_i32 = arith.constant 0 : i32
    return %arg0, %arg2 : i32, i32
  }
  func.func @transform_1(%arg0: i32, %arg1: i32, %arg2: i32) -> (i32, i32) {
    %c0_i32 = arith.constant 0 : i32
    return %arg2, %arg1 : i32, i32
  }
  func.func @transform_2(%arg0: i32, %arg1: i32, %arg2: i32) -> (i32, i32) {
    %c0_i32 = arith.constant 0 : i32
    %c0_i32_0 = arith.constant 0 : i32
    return %c0_i32, %arg1 : i32, i32
  }
  func.func @transform_3(%arg0: i32, %arg1: i32, %arg2: i32) -> (i32, i32) {
    %c0_i32 = arith.constant 0 : i32
    return %arg0, %arg1 : i32, i32
  }
}

module attributes {stable_mosaic.version = 11 : i64} {
  func.func @_mm_bias_kernel(%arg0: i32, %arg1: i32, %arg2: i32, %arg3: memref<64x640xbf16, #tpu.memory_space<vmem>>, %arg4: memref<640x128xbf16, #tpu.memory_space<vmem>>, %arg5: memref<1x128xf32, #tpu.memory_space<vmem>>, %arg6: memref<64x128xbf16, #tpu.memory_space<vmem>>, %arg7: memref<64x128xf32, #tpu.memory_space<vmem>>) attributes {dimension_semantics = [#tpu.dimension_semantics<parallel>, #tpu.dimension_semantics<parallel>, #tpu.dimension_semantics<arbitrary>], iteration_bounds = array<i64: 2, 1, 1>, scalar_prefetch = 0 : i64, scratch_operands = 1 : i64, tpu.core_type = #tpu.core_type<tc>, window_params = [{transform_indices = @transform_0, window_bounds = array<i64: 64, 640>}, {transform_indices = @transform_1, window_bounds = array<i64: 640, 128>}, {transform_indices = @transform_2, window_bounds = array<i64: 1, 128>}, {transform_indices = @transform_3, window_bounds = array<i64: 64, 128>}]} {
    %c0_i32 = arith.constant 0 : i32
    %0 = arith.cmpi eq, %arg2, %c0_i32 : i32
    %1 = arith.extui %0 : i1 to i32
    %c0_i32_0 = arith.constant 0 : i32
    %2 = arith.cmpi ne, %1, %c0_i32_0 : i32
    scf.if %2 {
      %c0_10 = arith.constant 0 : index
      %c0_11 = arith.constant 0 : index
      %12 = vector.load %arg5[%c0_10, %c0_11] : memref<1x128xf32, #tpu.memory_space<vmem>>, vector<1x128xf32>
      %13 = vector.shape_cast %12 : vector<1x128xf32> to vector<1x128xf32>
      %14 = vector.broadcast %13 : vector<1x128xf32> to vector<64x128xf32>
      %c0_12 = arith.constant 0 : index
      %c0_13 = arith.constant 0 : index
      %15 = vector.load %arg7[%c0_12, %c0_13] : memref<64x128xf32, #tpu.memory_space<vmem>>, vector<64x128xf32>
      tpu.vector_store %arg7[%c0_12, %c0_13], %14 {strides = array<i32>} : memref<64x128xf32, #tpu.memory_space<vmem>>, vector<64x128xf32>,
    } else {
    }
    %c0 = arith.constant 0 : index
    %c0_1 = arith.constant 0 : index
    %3 = vector.load %arg7[%c0, %c0_1] : memref<64x128xf32, #tpu.memory_space<vmem>>, vector<64x128xf32>
    %c0_2 = arith.constant 0 : index
    %c0_3 = arith.constant 0 : index
    %4 = vector.load %arg3[%c0_2, %c0_3] : memref<64x640xbf16, #tpu.memory_space<vmem>>, vector<64x640xbf16>
    %c0_4 = arith.constant 0 : index
    %c0_5 = arith.constant 0 : index
    %5 = vector.load %arg4[%c0_4, %c0_5] : memref<640x128xbf16, #tpu.memory_space<vmem>>, vector<640x128xbf16>
    %cst = arith.constant dense<0.000000e+00> : vector<64x128xf32>
    %6 = tpu.matmul %4, %5, %cst {dimension_numbers = #tpu.dot_dimension_numbers<[1], [0], [0], [1], [0, 0, 1, 1], [], []>} : vector<64x640xbf16>, vector<640x128xbf16>, vector<64x128xf32> -> vector<64x128xf32>
    %7 = arith.addf %3, %6 : vector<64x128xf32>
    %c0_6 = arith.constant 0 : index
    %c0_7 = arith.constant 0 : index
    %8 = vector.load %arg7[%c0_6, %c0_7] : memref<64x128xf32, #tpu.memory_space<vmem>>, vector<64x128xf32>
    tpu.vector_store %arg7[%c0_6, %c0_7], %7 {strides = array<i32>} : memref<64x128xf32, #tpu.memory_space<vmem>>, vector<64x128xf32>,
    %c0_i32_8 = arith.constant 0 : i32
    %9 = arith.cmpi eq, %arg2, %c0_i32_8 : i32
    %10 = arith.extui %9 : i1 to i32
    %c0_i32_9 = arith.constant 0 : i32
    %11 = arith.cmpi ne, %10, %c0_i32_9 : i32
    scf.if %11 {
      %c0_10 = arith.constant 0 : index
      %c0_11 = arith.constant 0 : index
      %12 = vector.load %arg7[%c0_10, %c0_11] : memref<64x128xf32, #tpu.memory_space<vmem>>, vector<64x128xf32>
      %cst_12 = arith.constant 0.000000e+00 : f32
      %13 = vector.broadcast %cst_12 : f32 to vector<64x128xf32>
      %14 = arith.maximumf %12, %13 : vector<64x128xf32>
      %15 = arith.truncf %14 : vector<64x128xf32> to vector<64x128xbf16>
      %c0_13 = arith.constant 0 : index
      %c0_14 = arith.constant 0 : index
      %16 = vector.load %arg6[%c0_13, %c0_14] : memref<64x128xbf16, #tpu.memory_space<vmem>>, vector<64x128xbf16>
      tpu.vector_store %arg6[%c0_13, %c0_14], %15 {strides = array<i32>} : memref<64x128xbf16, #tpu.memory_space<vmem>>, vector<64x128xbf16>,
    } else {
    }
    return
  }
  func.func @transform_0(%arg0: i32, %arg1: i32, %arg2: i32) -> (i32, i32) {
    %c0_i32 = arith.constant 0 : i32
    return %arg0, %arg2 : i32, i32
  }
  func.func @transform_1(%arg0: i32, %arg1: i32, %arg2: i32) -> (i32, i32) {
    %c0_i32 = arith.constant 0 : i32
    return %arg2, %arg1 : i32, i32
  }
  func.func @transform_2(%arg0: i32, %arg1: i32, %arg2: i32) -> (i32, i32) {
    %c0_i32 = arith.constant 0 : i32
    %c0_i32_0 = arith.constant 0 : i32
    return %c0_i32, %arg1 : i32, i32
  }
  func.func @transform_3(%arg0: i32, %arg1: i32, %arg2: i32) -> (i32, i32) {
    %c0_i32 = arith.constant 0 : i32
    return %arg0, %arg1 : i32, i32
  }
}

module attributes {stable_mosaic.version = 11 : i64} {
  func.func @_mm_bias_res_kernel(%arg0: i32, %arg1: i32, %arg2: i32, %arg3: memref<64x640xbf16, #tpu.memory_space<vmem>>, %arg4: memref<640x128xbf16, #tpu.memory_space<vmem>>, %arg5: memref<1x128xf32, #tpu.memory_space<vmem>>, %arg6: memref<64x128xbf16, #tpu.memory_space<vmem>>, %arg7: memref<64x128xbf16, #tpu.memory_space<vmem>>, %arg8: memref<64x128xf32, #tpu.memory_space<vmem>>) attributes {dimension_semantics = [#tpu.dimension_semantics<parallel>, #tpu.dimension_semantics<parallel>, #tpu.dimension_semantics<arbitrary>], iteration_bounds = array<i64: 2, 1, 1>, scalar_prefetch = 0 : i64, scratch_operands = 1 : i64, tpu.core_type = #tpu.core_type<tc>, window_params = [{transform_indices = @transform_0, window_bounds = array<i64: 64, 640>}, {transform_indices = @transform_1, window_bounds = array<i64: 640, 128>}, {transform_indices = @transform_2, window_bounds = array<i64: 1, 128>}, {transform_indices = @transform_3, window_bounds = array<i64: 64, 128>}, {transform_indices = @transform_4, window_bounds = array<i64: 64, 128>}]} {
    %c0_i32 = arith.constant 0 : i32
    %0 = arith.cmpi eq, %arg2, %c0_i32 : i32
    %1 = arith.extui %0 : i1 to i32
    %c0_i32_0 = arith.constant 0 : i32
    %2 = arith.cmpi ne, %1, %c0_i32_0 : i32
    scf.if %2 {
      %c0_10 = arith.constant 0 : index
      %c0_11 = arith.constant 0 : index
      %12 = vector.load %arg5[%c0_10, %c0_11] : memref<1x128xf32, #tpu.memory_space<vmem>>, vector<1x128xf32>
      %13 = vector.shape_cast %12 : vector<1x128xf32> to vector<1x128xf32>
      %14 = vector.broadcast %13 : vector<1x128xf32> to vector<64x128xf32>
      %c0_12 = arith.constant 0 : index
      %c0_13 = arith.constant 0 : index
      %15 = vector.load %arg8[%c0_12, %c0_13] : memref<64x128xf32, #tpu.memory_space<vmem>>, vector<64x128xf32>
      tpu.vector_store %arg8[%c0_12, %c0_13], %14 {strides = array<i32>} : memref<64x128xf32, #tpu.memory_space<vmem>>, vector<64x128xf32>,
    } else {
    }
    %c0 = arith.constant 0 : index
    %c0_1 = arith.constant 0 : index
    %3 = vector.load %arg8[%c0, %c0_1] : memref<64x128xf32, #tpu.memory_space<vmem>>, vector<64x128xf32>
    %c0_2 = arith.constant 0 : index
    %c0_3 = arith.constant 0 : index
    %4 = vector.load %arg3[%c0_2, %c0_3] : memref<64x640xbf16, #tpu.memory_space<vmem>>, vector<64x640xbf16>
    %c0_4 = arith.constant 0 : index
    %c0_5 = arith.constant 0 : index
    %5 = vector.load %arg4[%c0_4, %c0_5] : memref<640x128xbf16, #tpu.memory_space<vmem>>, vector<640x128xbf16>
    %cst = arith.constant dense<0.000000e+00> : vector<64x128xf32>
    %6 = tpu.matmul %4, %5, %cst {dimension_numbers = #tpu.dot_dimension_numbers<[1], [0], [0], [1], [0, 0, 1, 1], [], []>} : vector<64x640xbf16>, vector<640x128xbf16>, vector<64x128xf32> -> vector<64x128xf32>
    %7 = arith.addf %3, %6 : vector<64x128xf32>
    %c0_6 = arith.constant 0 : index
    %c0_7 = arith.constant 0 : index
    %8 = vector.load %arg8[%c0_6, %c0_7] : memref<64x128xf32, #tpu.memory_space<vmem>>, vector<64x128xf32>
    tpu.vector_store %arg8[%c0_6, %c0_7], %7 {strides = array<i32>} : memref<64x128xf32, #tpu.memory_space<vmem>>, vector<64x128xf32>,
    %c0_i32_8 = arith.constant 0 : i32
    %9 = arith.cmpi eq, %arg2, %c0_i32_8 : i32
    %10 = arith.extui %9 : i1 to i32
    %c0_i32_9 = arith.constant 0 : i32
    %11 = arith.cmpi ne, %10, %c0_i32_9 : i32
    scf.if %11 {
      %c0_10 = arith.constant 0 : index
      %c0_11 = arith.constant 0 : index
      %12 = vector.load %arg8[%c0_10, %c0_11] : memref<64x128xf32, #tpu.memory_space<vmem>>, vector<64x128xf32>
      %c0_12 = arith.constant 0 : index
      %c0_13 = arith.constant 0 : index
      %13 = vector.load %arg6[%c0_12, %c0_13] : memref<64x128xbf16, #tpu.memory_space<vmem>>, vector<64x128xbf16>
      %14 = arith.extf %13 : vector<64x128xbf16> to vector<64x128xf32>
      %15 = arith.addf %12, %14 : vector<64x128xf32>
      %cst_14 = arith.constant 0.000000e+00 : f32
      %16 = vector.broadcast %cst_14 : f32 to vector<64x128xf32>
      %17 = arith.maximumf %15, %16 : vector<64x128xf32>
      %18 = arith.truncf %17 : vector<64x128xf32> to vector<64x128xbf16>
      %c0_15 = arith.constant 0 : index
      %c0_16 = arith.constant 0 : index
      %19 = vector.load %arg7[%c0_15, %c0_16] : memref<64x128xbf16, #tpu.memory_space<vmem>>, vector<64x128xbf16>
      tpu.vector_store %arg7[%c0_15, %c0_16], %18 {strides = array<i32>} : memref<64x128xbf16, #tpu.memory_space<vmem>>, vector<64x128xbf16>,
    } else {
    }
    return
  }
  func.func @transform_0(%arg0: i32, %arg1: i32, %arg2: i32) -> (i32, i32) {
    %c0_i32 = arith.constant 0 : i32
    return %arg0, %arg2 : i32, i32
  }
  func.func @transform_1(%arg0: i32, %arg1: i32, %arg2: i32) -> (i32, i32) {
    %c0_i32 = arith.constant 0 : i32
    return %arg2, %arg1 : i32, i32
  }
  func.func @transform_2(%arg0: i32, %arg1: i32, %arg2: i32) -> (i32, i32) {
    %c0_i32 = arith.constant 0 : i32
    %c0_i32_0 = arith.constant 0 : i32
    return %c0_i32, %arg1 : i32, i32
  }
  func.func @transform_3(%arg0: i32, %arg1: i32, %arg2: i32) -> (i32, i32) {
    %c0_i32 = arith.constant 0 : i32
    return %arg0, %arg1 : i32, i32
  }
  func.func @transform_4(%arg0: i32, %arg1: i32, %arg2: i32) -> (i32, i32) {
    %c0_i32 = arith.constant 0 : i32
    return %arg0, %arg1 : i32, i32
  }
}

</mosaic_0001>

<bundles_post_ra>
// kernel: resnet_classifier_forward.5
= control target key start
LH: loop header
LB: loop body
LE: loop exit
PB: predicated region body
PF: predicated region fallthrough
CT: control target
= control target key end

     0   :  { %s1712_s12 = smov 0   ;;  %s1714_s13 = smov 0   ;;  %s1886_s0 = inlined_call_operand.vmem [shape: bf16[512,256], index: 0, kind: input, shape index: {}]   ;;  %s1887_s1 = inlined_call_operand.vmem [shape: bf16[256,128], index: 1, kind: input, shape index: {}]   ;;  %s1888_s2 = inlined_call_operand.vmem [shape: f32[1,128], index: 2, kind: input, shape index: {}]   ;;  %s1889_s3 = inlined_call_operand.vmem [shape: bf16[512,128], index: 3, kind: output, shape index: {}]  }
   0x1   :  { %s1716_s14 = smov 0  }
   0x2 LB: > { %s32_s15 = sadd.s32 1, %s1686_s13  ;;  %p1235_p0 = scmp.ge.s32.totalorder %s1690_s14, 1  ;;  %s1690_s14 = sphi %s1716_s14, %s13_s14   ;;  %s1686_s13 = sphi %s1714_s13, %s1891_s13   ;;  %s1682_s12 = sphi %s1712_s12, %s1890_s12  }
   0x3   : > { %p34_p1 = scmp.ge.s32.totalorder %s32_s15, 2  ;;  %p191_p2 = scmp.lt.s32.totalorder %s1690_s14, 3 }
   0x5   : > { %s1893_s15 = smov (%p34_p1, %s32_s15), 0  ;;  %p192_p3 = pnand %p1235_p0, %p191_p2 }
   0x6   : > { %v1604_v0 = vld [vmem:[%s1887_s1 + $0x40] sm:$0xff] (!%p192_p3)   ;;  %s1236_s18 = sshll.u32 (!%p192_p3), %s1682_s12, 5  ;;  %v1606_v2 = vld [vmem:[%s1887_s1 + $0x48] sm:$0xff] (!%p192_p3)   ;;  %v1608_v4 = vld [vmem:[%s1887_s1 + $0x50] sm:$0xff] (!%p192_p3)  }
   0x7   : > { %195 = sbr.rel (%p192_p3) target bundleno = 320 (0x140), region = 32  ;;  %v1605_v1 = vld [vmem:[%s1887_s1] sm:$0xff] (!%p192_p3)   ;;  %1452 = vmatprep.subr.bf16.mxu0 (!%p192_p3), %v1604_v0  ;;  %1564 = vmatprep.subr.bf16.mxu1 (!%p192_p3), %v1604_v0  ;;  %v1607_v3 = vld [vmem:[%s1887_s1 + $0x8] sm:$0xff] (!%p192_p3)   ;;  %p236_p4 = scmp.lt.s32.totalorder (!%p192_p3), %s1236_s18, 63  ;;  %v1609_v5 = vld [vmem:[%s1887_s1 + $0x10] sm:$0xff] (!%p192_p3)  }
   0x8   : > { %1453 = vmatpush3.bf16.msra.mxu0 (!%p192_p3), %v1605_v1  ;;  %1572 = vmatpush3.bf16.msra.mxu1 (!%p192_p3), %v1605_v1  ;;  %v1610_v6 = vld [vmem:[%s1887_s1 + $0x58] sm:$0xff] (!%p192_p3)   ;;  %v1612_v8 = vld [vmem:[%s1887_s1 + $0x60] sm:$0xff] (!%p192_p3)   ;;  %v1614_v10 = vld [vmem:[%s1887_s1 + $0x68] sm:$0xff] (!%p192_p3)  }
   0x9   : > { %1454 = vmatprep.subr.bf16.mxu0 (!%p192_p3), %v1606_v2  ;;  %1565 = vmatprep.subr.bf16.mxu1 (!%p192_p3), %v1606_v2  ;;  %v1611_v7 = vld [vmem:[%s1887_s1 + $0x18] sm:$0xff] (!%p192_p3)   ;;  %v1613_v9 = vld [vmem:[%s1887_s1 + $0x20] sm:$0xff] (!%p192_p3)   ;;  %v1615_v13 = vld [vmem:[%s1887_s1 + $0x28] sm:$0xff] (!%p192_p3)  }
   0xa   : > { %v1616_v14 = vld [vmem:[%s1887_s1 + $0x70] sm:$0xff] (!%p192_p3)   ;;  %v1618_v16 = vld [vmem:[%s1887_s1 + $0x78] sm:$0xff] (!%p192_p3)   ;;  %v1821_v50 = vld [vmem:[%s1888_s2] ss:$0 sm:$0xff] (!%p192_p3) }
   0xb   : > { %v1617_v15 = vld [vmem:[%s1887_s1 + $0x30] sm:$0xff] (!%p192_p3)   ;;  %v1619_v17 = vld [vmem:[%s1887_s1 + $0x38] sm:$0xff] (!%p192_p3)  }
   0xc   : > { %1455 = vmatpush3.bf16.msra.mxu0 (!%p192_p3), %v1607_v3  ;;  %1573 = vmatpush3.bf16.msra.mxu1 (!%p192_p3), %v1607_v3 }
   0xd   : > { %1456 = vmatprep.subr.bf16.mxu0 (!%p192_p3), %v1608_v4  ;;  %1566 = vmatprep.subr.bf16.mxu1 (!%p192_p3), %v1608_v4 }
   0xe   : > { %s1895_s18 = smov (!%p236_p4, %s1236_s18), 63 }
   0xf   : > { %s1324_s6 = sshll.u32 %s1895_s18, 3  ;;  %s1240_s5 = sshll.u32 %s1895_s18, 2 }
  0x10   : > { %1457 = vmatpush3.bf16.msra.mxu0 %v1609_v5  ;;  %1574 = vmatpush3.bf16.msra.mxu1 %v1609_v5  ;;  %s1763_s11 = scalar_lea.vmem %s1886_s0, %s1324_s6  ;;  %s1831_s8 = scalar_lea.vmem %s1889_s3, %s1240_s5 }
  0x11   : > { %1458 = vmatprep.subr.bf16.mxu0 %v1610_v6  ;;  %1567 = vmatprep.subr.bf16.mxu1 %v1610_v6  ;;  %v1622_v11 = vld [vmem:[%s1763_s11 + $0x4] ss:$8 sps:$4 sm:$0xff]   ;;  %v1620_v18 = vld [vmem:[%s1763_s11] ss:$8 sps:$4 sm:$0xff]   ;;  %v1626_v20 = vld [vmem:[%s1763_s11 + $0x14] ss:$8 sps:$4 sm:$0xff]  }
  0x12   : > { %v1625_v12 = vld [vmem:[%s1763_s11 + $0x84] ss:$8 sps:$4 sm:$0xff]   ;;  %695 = vmatprep.mubr.bf16.mxu0 %v1622_v11  ;;  %v1623_v19 = vld [vmem:[%s1763_s11 + $0x80] ss:$8 sps:$4 sm:$0xff]   ;;  %v1628_v21 = vld [vmem:[%s1763_s11 + $0x94] ss:$8 sps:$4 sm:$0xff]  }
  0x13   : > { %759 = vmatprep.mubr.bf16.mxu1 %v1625_v12  ;;  %v1630_v22 = vld [vmem:[%s1763_s11 + $0x10] ss:$8 sps:$4 sm:$0xff]   ;;  %v1632_v24 = vld [vmem:[%s1763_s11 + $0x24] ss:$8 sps:$4 sm:$0xff]   ;;  %v1636_v26 = vld [vmem:[%s1763_s11 + $0x20] ss:$8 sps:$4 sm:$0xff]  }
  0x14   : > { %1459 = vmatpush3.bf16.msra.mxu0 %v1611_v7  ;;  %1575 = vmatpush3.bf16.msra.mxu1 %v1611_v7  ;;  %v1631_v23 = vld [vmem:[%s1763_s11 + $0x90] ss:$8 sps:$4 sm:$0xff]   ;;  %v1634_v25 = vld [vmem:[%s1763_s11 + $0xa4] ss:$8 sps:$4 sm:$0xff]   ;;  %v1637_v27 = vld [vmem:[%s1763_s11 + $0xa0] ss:$8 sps:$4 sm:$0xff]  }
  0x15   : > { %1460 = vmatprep.subr.bf16.mxu0 %v1612_v8  ;;  %1568 = vmatprep.subr.bf16.mxu1 %v1612_v8  ;;  %v1638_v28 = vld [vmem:[%s1763_s11 + $0x34] ss:$8 sps:$4 sm:$0xff]   ;;  %v1642_v30 = vld [vmem:[%s1763_s11 + $0x30] ss:$8 sps:$4 sm:$0xff]   ;;  %v1644_v32 = vld [vmem:[%s1763_s11 + $0x44] ss:$8 sps:$4 sm:$0xff]  }
  0x16   : > { %v1640_v29 = vld [vmem:[%s1763_s11 + $0xb4] ss:$8 sps:$4 sm:$0xff]   ;;  %v1643_v31 = vld [vmem:[%s1763_s11 + $0xb0] ss:$8 sps:$4 sm:$0xff]   ;;  %v1646_v33 = vld [vmem:[%s1763_s11 + $0xc4] ss:$8 sps:$4 sm:$0xff]  }
  0x17   : > { %v1648_v34 = vld [vmem:[%s1763_s11 + $0x40] ss:$8 sps:$4 sm:$0xff]   ;;  %v1650_v36 = vld [vmem:[%s1763_s11 + $0x54] ss:$8 sps:$4 sm:$0xff]   ;;  %v1654_v38 = vld [vmem:[%s1763_s11 + $0x50] ss:$8 sps:$4 sm:$0xff]  }
  0x18   : > { %1461 = vmatpush3.bf16.msra.mxu0 %v1613_v9  ;;  %1576 = vmatpush3.bf16.msra.mxu1 %v1613_v9  ;;  %v1649_v35 = vld [vmem:[%s1763_s11 + $0xc0] ss:$8 sps:$4 sm:$0xff]   ;;  %v1652_v37 = vld [vmem:[%s1763_s11 + $0xd4] ss:$8 sps:$4 sm:$0xff]   ;;  %v1655_v39 = vld [vmem:[%s1763_s11 + $0xd0] ss:$8 sps:$4 sm:$0xff]  }
  0x19   : > { %1462 = vmatprep.subr.bf16.mxu0 %v1614_v10  ;;  %1569 = vmatprep.subr.bf16.mxu1 %v1614_v10  ;;  %v1656_v40 = vld [vmem:[%s1763_s11 + $0x64] ss:$8 sps:$4 sm:$0xff]   ;;  %v1660_v42 = vld [vmem:[%s1763_s11 + $0x60] ss:$8 sps:$4 sm:$0xff]   ;;  %v1662_v44 = vld [vmem:[%s1763_s11 + $0x74] ss:$8 sps:$4 sm:$0xff]  }
  0x1a   : > { %v1658_v41 = vld [vmem:[%s1763_s11 + $0xe4] ss:$8 sps:$4 sm:$0xff]   ;;  %v1661_v43 = vld [vmem:[%s1763_s11 + $0xe0] ss:$8 sps:$4 sm:$0xff]   ;;  %v1664_v45 = vld [vmem:[%s1763_s11 + $0xf4] ss:$8 sps:$4 sm:$0xff]  }
  0x1b   : > { %v1666_v46 = vld [vmem:[%s1763_s11 + $0x70] ss:$8 sps:$4 sm:$0xff]  }
  0x1c   : > { %1463 = vmatpush3.bf16.msra.mxu0 %v1615_v13  ;;  %1577 = vmatpush3.bf16.msra.mxu1 %v1615_v13  ;;  %v1667_v47 = vld [vmem:[%s1763_s11 + $0xf0] ss:$8 sps:$4 sm:$0xff]  }
  0x1d   : > { %1464 = vmatprep.subr.bf16.mxu0 %v1616_v14  ;;  %1570 = vmatprep.subr.bf16.mxu1 %v1616_v14 }
  0x20   : > { %1465 = vmatpush3.bf16.msra.mxu0 %v1617_v15  ;;  %1578 = vmatpush3.bf16.msra.mxu1 %v1617_v15 }
  0x21   : > { %1466 = vmatprep.subr.bf16.mxu0 %v1618_v16  ;;  %1571 = vmatprep.subr.bf16.mxu1 %v1618_v16 }
  0x24   : > { %1467 = vmatpush3.bf16.msra.mxu0 %v1619_v17  ;;  %1579 = vmatpush3.bf16.msra.mxu1 %v1619_v17 }
  0x27   : > { %696 = vmatmul.mubr.bf16.vlgmr.msra.gmra.mrb[0].mxu0 %v1620_v18  ;;  %760 = vmatmul.mubr.bf16.vlgmr.msra.gmra.mrb[0].mxu1 %v1623_v19 }
  0x28   : > { %703 = vmatprep.mubr.bf16.mxu0 %v1626_v20  ;;  %767 = vmatprep.mubr.bf16.mxu1 %v1628_v21 }
  0x2f   : > { %704 = vmatmul.mubr.bf16.gmra.mrb[4].mxu0 %v1630_v22  ;;  %768 = vmatmul.mubr.bf16.gmra.mrb[4].mxu1 %v1631_v23 }
  0x30   : > { %711 = vmatprep.mubr.bf16.mxu0 %v1632_v24  ;;  %775 = vmatprep.mubr.bf16.mxu1 %v1634_v25 }
  0x37   : > { %712 = vmatmul.mubr.bf16.gmra.mrb[8].mxu0 %v1636_v26  ;;  %776 = vmatmul.mubr.bf16.gmra.mrb[8].mxu1 %v1637_v27 }
  0x38   : > { %719 = vmatprep.mubr.bf16.mxu0 %v1638_v28  ;;  %783 = vmatprep.mubr.bf16.mxu1 %v1640_v29 }
  0x3f   : > { %720 = vmatmul.mubr.bf16.gmra.mrb[12].mxu0 %v1642_v30  ;;  %784 = vmatmul.mubr.bf16.gmra.mrb[12].mxu1 %v1643_v31 }
  0x40   : > { %727 = vmatprep.mubr.bf16.mxu0 %v1644_v32  ;;  %791 = vmatprep.mubr.bf16.mxu1 %v1646_v33 }
  0x47   : > { %728 = vmatmul.mubr.bf16.gmra.mrb[16].mxu0 %v1648_v34  ;;  %792 = vmatmul.mubr.bf16.gmra.mrb[16].mxu1 %v1649_v35 }
  0x48   : > { %735 = vmatprep.mubr.bf16.mxu0 %v1650_v36  ;;  %799 = vmatprep.mubr.bf16.mxu1 %v1652_v37 }
  0x4f   : > { %736 = vmatmul.mubr.bf16.gmra.mrb[20].mxu0 %v1654_v38  ;;  %800 = vmatmul.mubr.bf16.gmra.mrb[20].mxu1 %v1655_v39 }
  0x50   : > { %743 = vmatprep.mubr.bf16.mxu0 %v1656_v40  ;;  %807 = vmatprep.mubr.bf16.mxu1 %v1658_v41 }
  0x57   : > { %744 = vmatmul.mubr.bf16.gmra.mrb[24].mxu0 %v1660_v42  ;;  %808 = vmatmul.mubr.bf16.gmra.mrb[24].mxu1 %v1661_v43 }
  0x58   : > { %751 = vmatprep.mubr.bf16.mxu0 %v1662_v44  ;;  %815 = vmatprep.mubr.bf16.mxu1 %v1664_v45 }
  0x5f   : > { %752 = vmatmul.mubr.bf16.gmra.mrb[28].mxu0 %v1666_v46  ;;  %816 = vmatmul.mubr.bf16.gmra.mrb[28].mxu1 %v1667_v47 }
  0xfa   : > { %v1468_v48 = vpop.f32.mrb[0].mxu0  ;;  %v1516_v49 = vpop.f32.mrb[0].mxu1 }
  0xfb   : > { %v1469_v51 = vpop.f32.mrb[1].mxu0  ;;  %v1517_v52 = vpop.f32.mrb[1].mxu1 }
  0xfc   : > { %v1470_v53 = vadd.f32 %v1469_v51, %v1468_v48  ;;  %v1518_v54 = vadd.f32 %v1517_v52, %v1516_v49  ;;  %v1471_v55 = vpop.f32.mrb[2].mxu0  ;;  %v1519_v56 = vpop.f32.mrb[2].mxu1 }
  0xfd   : > { %v1472_v57 = vpop.f32.mrb[3].mxu0  ;;  %v1520_v58 = vpop.f32.mrb[3].mxu1 }
  0xfe   : > { %v824_v59 = vadd.f32 %v1470_v53, %v1821_v50  ;;  %v840_v60 = vadd.f32 %v1518_v54, %v1821_v50  ;;  %v1473_v61 = vadd.f32 %v1472_v57, %v1471_v55  ;;  %v1521_v62 = vadd.f32 %v1520_v58, %v1519_v56 }
 0x100   : > { %v825_v63 = vadd.f32 %v1473_v61, %v1821_v50  ;;  %v841_v0 = vadd.f32 %v1521_v62, %v1821_v50  ;;  %v923_v1 = vmax.f32 %v824_v59, 0.0  ;;  %v939_v2 = vmax.f32 %v840_v60, 0.0 }
 0x102   : > { %v924_v3 = vmax.f32 %v825_v63, 0.0  ;;  %v940_v4 = vmax.f32 %v841_v0, 0.0  ;;  %v1474_v5 = vpop.f32.mrb[4].mxu0  ;;  %v1522_v6 = vpop.f32.mrb[4].mxu1 }
 0x103   : > { %v1475_v7 = vpop.f32.mrb[5].mxu0  ;;  %v1523_v8 = vpop.f32.mrb[5].mxu1 }
 0x104   : > { %v1360_v9 = vpack.c.bf16 %v924_v3, %v923_v1  ;;  %v1400_v10 = vpack.c.bf16 %v940_v4, %v939_v2  ;;  %v1476_v11 = vadd.f32 %v1475_v7, %v1474_v5  ;;  %v1524_v12 = vadd.f32 %v1523_v8, %v1522_v6  ;;  %v1477_v13 = vpop.f32.mrb[6].mxu0  ;;  %v1525_v14 = vpop.f32.mrb[6].mxu1 }
 0x105   : > { %v1478_v15 = vpop.f32.mrb[7].mxu0  ;;  %v1526_v16 = vpop.f32.mrb[7].mxu1 }
 0x106   : > { %1361 = vst [vmem:[%s1831_s8] sm:$0xff] %v1360_v9   ;;  %1444 = vst [vmem:[%s1831_s8 + $0x40] sm:$0xff] %v1400_v10   ;;  %v826_v17 = vadd.f32 %v1476_v11, %v1821_v50  ;;  %v842_v18 = vadd.f32 %v1524_v12, %v1821_v50  ;;  %v1479_v19 = vadd.f32 %v1478_v15, %v1477_v13 }
 0x107   : > { %v1527_v20 = vadd.f32 %v1526_v16, %v1525_v14 }
 0x108   : > { %v827_v21 = vadd.f32 %v1479_v19, %v1821_v50  ;;  %v925_v23 = vmax.f32 %v826_v17, 0.0  ;;  %v941_v24 = vmax.f32 %v842_v18, 0.0 }
 0x109   : > { %v843_v22 = vadd.f32 %v1527_v20, %v1821_v50 }
 0x10a   : > { %v926_v25 = vmax.f32 %v827_v21, 0.0  ;;  %v1480_v27 = vpop.f32.mrb[8].mxu0  ;;  %v1528_v28 = vpop.f32.mrb[8].mxu1 }
 0x10b   : > { %v942_v26 = vmax.f32 %v843_v22, 0.0  ;;  %v1481_v29 = vpop.f32.mrb[9].mxu0  ;;  %v1529_v30 = vpop.f32.mrb[9].mxu1 }
 0x10c   : > { %v1365_v31 = vpack.c.bf16 %v926_v25, %v925_v23  ;;  %v1482_v33 = vadd.f32 %v1481_v29, %v1480_v27  ;;  %v1530_v34 = vadd.f32 %v1529_v30, %v1528_v28  ;;  %v1483_v35 = vpop.f32.mrb[10].mxu0  ;;  %v1531_v36 = vpop.f32.mrb[10].mxu1 }
 0x10d   : > { %v1405_v32 = vpack.c.bf16 %v942_v26, %v941_v24  ;;  %v1484_v37 = vpop.f32.mrb[11].mxu0  ;;  %v1532_v38 = vpop.f32.mrb[11].mxu1 }
 0x10e   : > { %1437 = vst [vmem:[%s1831_s8 + $0x8] sm:$0xff] %v1365_v31   ;;  %v828_v39 = vadd.f32 %v1482_v33, %v1821_v50  ;;  %v844_v40 = vadd.f32 %v1530_v34, %v1821_v50  ;;  %v1485_v41 = vadd.f32 %v1484_v37, %v1483_v35  ;;  %v1533_v42 = vadd.f32 %v1532_v38, %v1531_v36 }
 0x10f   : > { %1445 = vst [vmem:[%s1831_s8 + $0x48] sm:$0xff] %v1405_v32  }
 0x110   : > { %v829_v43 = vadd.f32 %v1485_v41, %v1821_v50  ;;  %v845_v44 = vadd.f32 %v1533_v42, %v1821_v50  ;;  %v927_v45 = vmax.f32 %v828_v39, 0.0  ;;  %v943_v46 = vmax.f32 %v844_v40, 0.0 }
 0x112   : > { %v928_v47 = vmax.f32 %v829_v43, 0.0  ;;  %v944_v48 = vmax.f32 %v845_v44, 0.0  ;;  %v1486_v49 = vpop.f32.mrb[12].mxu0  ;;  %v1534_v51 = vpop.f32.mrb[12].mxu1 }
 0x113   : > { %v1487_v52 = vpop.f32.mrb[13].mxu0  ;;  %v1535_v53 = vpop.f32.mrb[13].mxu1 }
 0x114   : > { %v1370_v54 = vpack.c.bf16 %v928_v47, %v927_v45  ;;  %v1410_v55 = vpack.c.bf16 %v944_v48, %v943_v46  ;;  %v1488_v56 = vadd.f32 %v1487_v52, %v1486_v49  ;;  %v1536_v57 = vadd.f32 %v1535_v53, %v1534_v51  ;;  %v1489_v58 = vpop.f32.mrb[14].mxu0  ;;  %v1537_v59 = vpop.f32.mrb[14].mxu1 }
 0x115   : > { %v1490_v60 = vpop.f32.mrb[15].mxu0  ;;  %v1538_v61 = vpop.f32.mrb[15].mxu1 }
 0x116   : > { %1438 = vst [vmem:[%s1831_s8 + $0x10] sm:$0xff] %v1370_v54   ;;  %1446 = vst [vmem:[%s1831_s8 + $0x50] sm:$0xff] %v1410_v55   ;;  %v830_v62 = vadd.f32 %v1488_v56, %v1821_v50  ;;  %v846_v63 = vadd.f32 %v1536_v57, %v1821_v50  ;;  %v1491_v0 = vadd.f32 %v1490_v60, %v1489_v58 }
 0x117   : > { %v1539_v1 = vadd.f32 %v1538_v61, %v1537_v59 }
 0x118   : > { %v831_v2 = vadd.f32 %v1491_v0, %v1821_v50  ;;  %v929_v4 = vmax.f32 %v830_v62, 0.0  ;;  %v945_v5 = vmax.f32 %v846_v63, 0.0 }
 0x119   : > { %v847_v3 = vadd.f32 %v1539_v1, %v1821_v50 }
 0x11a   : > { %v930_v6 = vmax.f32 %v831_v2, 0.0  ;;  %v1492_v8 = vpop.f32.mrb[16].mxu0  ;;  %v1540_v9 = vpop.f32.mrb[16].mxu1 }
 0x11b   : > { %v946_v7 = vmax.f32 %v847_v3, 0.0  ;;  %v1493_v10 = vpop.f32.mrb[17].mxu0  ;;  %v1541_v11 = vpop.f32.mrb[17].mxu1 }
 0x11c   : > { %v1375_v12 = vpack.c.bf16 %v930_v6, %v929_v4  ;;  %v1494_v14 = vadd.f32 %v1493_v10, %v1492_v8  ;;  %v1542_v15 = vadd.f32 %v1541_v11, %v1540_v9  ;;  %v1495_v16 = vpop.f32.mrb[18].mxu0  ;;  %v1543_v17 = vpop.f32.mrb[18].mxu1 }
 0x11d   : > { %v1415_v13 = vpack.c.bf16 %v946_v7, %v945_v5  ;;  %v1496_v18 = vpop.f32.mrb[19].mxu0  ;;  %v1544_v19 = vpop.f32.mrb[19].mxu1 }
 0x11e   : > { %1439 = vst [vmem:[%s1831_s8 + $0x18] sm:$0xff] %v1375_v12   ;;  %v832_v20 = vadd.f32 %v1494_v14, %v1821_v50  ;;  %v848_v21 = vadd.f32 %v1542_v15, %v1821_v50  ;;  %v1497_v22 = vadd.f32 %v1496_v18, %v1495_v16  ;;  %v1545_v23 = vadd.f32 %v1544_v19, %v1543_v17 }
 0x11f   : > { %1447 = vst [vmem:[%s1831_s8 + $0x58] sm:$0xff] %v1415_v13  }
 0x120   : > { %v833_v24 = vadd.f32 %v1497_v22, %v1821_v50  ;;  %v849_v25 = vadd.f32 %v1545_v23, %v1821_v50  ;;  %v931_v26 = vmax.f32 %v832_v20, 0.0  ;;  %v947_v27 = vmax.f32 %v848_v21, 0.0 }
 0x122   : > { %v932_v28 = vmax.f32 %v833_v24, 0.0  ;;  %v948_v29 = vmax.f32 %v849_v25, 0.0  ;;  %v1498_v30 = vpop.f32.mrb[20].mxu0  ;;  %v1546_v31 = vpop.f32.mrb[20].mxu1 }
 0x123   : > { %v1499_v32 = vpop.f32.mrb[21].mxu0  ;;  %v1547_v33 = vpop.f32.mrb[21].mxu1 }
 0x124   : > { %v1380_v34 = vpack.c.bf16 %v932_v28, %v931_v26  ;;  %v1420_v35 = vpack.c.bf16 %v948_v29, %v947_v27  ;;  %v1500_v36 = vadd.f32 %v1499_v32, %v1498_v30  ;;  %v1548_v37 = vadd.f32 %v1547_v33, %v1546_v31  ;;  %v1501_v38 = vpop.f32.mrb[22].mxu0  ;;  %v1549_v39 = vpop.f32.mrb[22].mxu1 }
 0x125   : > { %v1502_v40 = vpop.f32.mrb[23].mxu0  ;;  %v1550_v41 = vpop.f32.mrb[23].mxu1 }
 0x126   : > { %1440 = vst [vmem:[%s1831_s8 + $0x20] sm:$0xff] %v1380_v34   ;;  %1448 = vst [vmem:[%s1831_s8 + $0x60] sm:$0xff] %v1420_v35   ;;  %v834_v42 = vadd.f32 %v1500_v36, %v1821_v50  ;;  %v850_v43 = vadd.f32 %v1548_v37, %v1821_v50  ;;  %v1503_v44 = vadd.f32 %v1502_v40, %v1501_v38 }
 0x127   : > { %v1551_v45 = vadd.f32 %v1550_v41, %v1549_v39 }
 0x128   : > { %v835_v46 = vadd.f32 %v1503_v44, %v1821_v50  ;;  %v933_v48 = vmax.f32 %v834_v42, 0.0  ;;  %v949_v49 = vmax.f32 %v850_v43, 0.0 }
 0x129   : > { %v851_v47 = vadd.f32 %v1551_v45, %v1821_v50 }
 0x12a   : > { %v934_v51 = vmax.f32 %v835_v46, 0.0  ;;  %v1504_v53 = vpop.f32.mrb[24].mxu0  ;;  %v1552_v54 = vpop.f32.mrb[24].mxu1 }
 0x12b   : > { %v950_v52 = vmax.f32 %v851_v47, 0.0  ;;  %v1505_v55 = vpop.f32.mrb[25].mxu0  ;;  %v1553_v56 = vpop.f32.mrb[25].mxu1 }
 0x12c   : > { %v1385_v57 = vpack.c.bf16 %v934_v51, %v933_v48  ;;  %v1506_v59 = vadd.f32 %v1505_v55, %v1504_v53  ;;  %v1554_v60 = vadd.f32 %v1553_v56, %v1552_v54  ;;  %v1507_v61 = vpop.f32.mrb[26].mxu0  ;;  %v1555_v62 = vpop.f32.mrb[26].mxu1 }
 0x12d   : > { %v1425_v58 = vpack.c.bf16 %v950_v52, %v949_v49  ;;  %v1508_v63 = vpop.f32.mrb[27].mxu0  ;;  %v1556_v0 = vpop.f32.mrb[27].mxu1 }
 0x12e   : > { %1441 = vst [vmem:[%s1831_s8 + $0x28] sm:$0xff] %v1385_v57   ;;  %v836_v1 = vadd.f32 %v1506_v59, %v1821_v50  ;;  %v852_v2 = vadd.f32 %v1554_v60, %v1821_v50  ;;  %v1509_v3 = vadd.f32 %v1508_v63, %v1507_v61  ;;  %v1557_v4 = vadd.f32 %v1556_v0, %v1555_v62 }
 0x12f   : > { %1449 = vst [vmem:[%s1831_s8 + $0x68] sm:$0xff] %v1425_v58  }
 0x130   : > { %v837_v5 = vadd.f32 %v1509_v3, %v1821_v50  ;;  %v853_v6 = vadd.f32 %v1557_v4, %v1821_v50  ;;  %v935_v7 = vmax.f32 %v836_v1, 0.0  ;;  %v951_v8 = vmax.f32 %v852_v2, 0.0 }
 0x132   : > { %v936_v9 = vmax.f32 %v837_v5, 0.0  ;;  %v952_v10 = vmax.f32 %v853_v6, 0.0  ;;  %v1510_v11 = vpop.f32.mrb[28].mxu0  ;;  %v1558_v12 = vpop.f32.mrb[28].mxu1 }
 0x133   : > { %v1511_v13 = vpop.f32.mrb[29].mxu0  ;;  %v1559_v14 = vpop.f32.mrb[29].mxu1 }
 0x134   : > { %v1390_v15 = vpack.c.bf16 %v936_v9, %v935_v7  ;;  %v1430_v16 = vpack.c.bf16 %v952_v10, %v951_v8  ;;  %v1512_v17 = vadd.f32 %v1511_v13, %v1510_v11  ;;  %v1560_v18 = vadd.f32 %v1559_v14, %v1558_v12  ;;  %v1513_v19 = vpop.f32.mrb[30].mxu0  ;;  %v1561_v20 = vpop.f32.mrb[30].mxu1 }
 0x135   : > { %v1514_v21 = vpop.f32.mrb[31].mxu0  ;;  %v1562_v22 = vpop.f32.mrb[31].mxu1 }
 0x136   : > { %1442 = vst [vmem:[%s1831_s8 + $0x30] sm:$0xff] %v1390_v15   ;;  %1450 = vst [vmem:[%s1831_s8 + $0x70] sm:$0xff] %v1430_v16   ;;  %v838_v23 = vadd.f32 %v1512_v17, %v1821_v50  ;;  %v854_v24 = vadd.f32 %v1560_v18, %v1821_v50  ;;  %v1515_v25 = vadd.f32 %v1514_v21, %v1513_v19 }
 0x137   : > { %v1563_v26 = vadd.f32 %v1562_v22, %v1561_v20 }
 0x138   : > { %v839_v27 = vadd.f32 %v1515_v25, %v1821_v50  ;;  %v937_v29 = vmax.f32 %v838_v23, 0.0  ;;  %v953_v30 = vmax.f32 %v854_v24, 0.0 }
 0x139   : > { %v855_v28 = vadd.f32 %v1563_v26, %v1821_v50 }
 0x13a   : > { %v938_v31 = vmax.f32 %v839_v27, 0.0 }
 0x13b   : > { %v954_v32 = vmax.f32 %v855_v28, 0.0 }
 0x13c   : > { %v1395_v33 = vpack.c.bf16 %v938_v31, %v937_v29 }
 0x13d   : > { %v1435_v34 = vpack.c.bf16 %v954_v32, %v953_v30 }
 0x13e   : > { %1443 = vst [vmem:[%s1831_s8 + $0x38] sm:$0xff] %v1395_v33  }
 0x13f   : > { %1451 = vst [vmem:[%s1831_s8 + $0x78] sm:$0xff] %v1435_v34  }
 0x140 PF: > { %s13_s14 = sadd.s32 1, %s1690_s14   ;;  %s1890_s12 = smov %s1686_s13 }
 0x141   : > { %p10_p5 = scmp.ge.s32.totalorder %s13_s14, 4   ;;  %s1891_s13 = smov %s1893_s15 }
 0x143   :  { %12 = sbr.rel (!%p10_p5) target bundleno = 2 (0x2), region = 76 }

// kernel: resnet_classifier_forward.6
= control target key start
LH: loop header
LB: loop body
LE: loop exit
PB: predicated region body
PF: predicated region fallthrough
CT: control target
= control target key end

     0   :  { %s1509_s12 = smov 0   ;;  %s1511_s13 = smov 0   ;;  %s1694_s0 = inlined_call_operand.vmem [shape: bf16[128,640], index: 0, kind: input, shape index: {}]   ;;  %s1695_s1 = inlined_call_operand.vmem [shape: bf16[640,128], index: 1, kind: input, shape index: {}]   ;;  %s1696_s2 = inlined_call_operand.vmem [shape: f32[1,128], index: 2, kind: input, shape index: {}]   ;;  %s1697_s3 = inlined_call_operand.vmem [shape: bf16[128,128], index: 3, kind: output, shape index: {}]  }
   0x1   :  { %s1513_s14 = smov 0  }
   0x2 LB: > { %s32_s15 = sadd.s32 1, %s1483_s13  ;;  %p1133_p0 = scmp.ge.s32.totalorder %s1487_s14, 1  ;;  %s1487_s14 = sphi %s1513_s14, %s13_s14   ;;  %s1483_s13 = sphi %s1511_s13, %s1699_s13   ;;  %s1479_s12 = sphi %s1509_s12, %s1698_s12  }
   0x3   : > { %p34_p1 = scmp.ge.s32.totalorder %s32_s15, 2  ;;  %p191_p2 = scmp.lt.s32.totalorder %s1487_s14, 3 }
   0x5   : > { %s1701_s15 = smov (%p34_p1, %s32_s15), 0  ;;  %p192_p3 = pnand %p1133_p0, %p191_p2 }
   0x6   : > { %v1397_v0 = vld [vmem:[%s1695_s1 + $0x40] sm:$0xff] (!%p192_p3)   ;;  %v1401_v4 = vld [vmem:[%s1695_s1 + $0x48] sm:$0xff] (!%p192_p3)   ;;  %v1405_v8 = vld [vmem:[%s1695_s1 + $0x50] sm:$0xff] (!%p192_p3)   ;;  %s1134_s23 = sshll.u32 (!%p192_p3), %s1479_s12, 3 }
   0x7   : > { %195 = sbr.rel (%p192_p3) target bundleno = 298 (0x12a), region = 32  ;;  %v1398_v1 = vld [vmem:[%s1695_s1 + $0xc0] sm:$0xff] (!%p192_p3)   ;;  %1240 = vmatprep.subr.bf16.mxu0 (!%p192_p3), %v1397_v0  ;;  %v1402_v5 = vld [vmem:[%s1695_s1 + $0xc8] sm:$0xff] (!%p192_p3)   ;;  %v1406_v9 = vld [vmem:[%s1695_s1 + $0xd0] sm:$0xff] (!%p192_p3)   ;;  %p236_p4 = scmp.lt.s32.totalorder (!%p192_p3), %s1134_s23, 15 }
   0x8   : > { %v1399_v2 = vld [vmem:[%s1695_s1] sm:$0xff] (!%p192_p3)   ;;  %1280 = vmatprep.subr.bf16.mxu1 (!%p192_p3), %v1398_v1  ;;  %v1403_v6 = vld [vmem:[%s1695_s1 + $0x8] sm:$0xff] (!%p192_p3)   ;;  %v1407_v10 = vld [vmem:[%s1695_s1 + $0x10] sm:$0xff] (!%p192_p3)  }
   0x9   : > { %v1400_v3 = vld [vmem:[%s1695_s1 + $0x80] sm:$0xff] (!%p192_p3)   ;;  %1241 = vmatpush3.bf16.msra.mxu0 (!%p192_p3), %v1399_v2  ;;  %v1404_v7 = vld [vmem:[%s1695_s1 + $0x88] sm:$0xff] (!%p192_p3)   ;;  %v1408_v11 = vld [vmem:[%s1695_s1 + $0x90] sm:$0xff] (!%p192_p3)  }
   0xa   : > { %1281 = vmatpush3.bf16.msra.mxu1 (!%p192_p3), %v1400_v3  ;;  %1242 = vmatprep.subr.bf16.mxu0 (!%p192_p3), %v1401_v4  ;;  %v1409_v12 = vld [vmem:[%s1695_s1 + $0x58] sm:$0xff] (!%p192_p3)   ;;  %v1413_v16 = vld [vmem:[%s1695_s1 + $0x60] sm:$0xff] (!%p192_p3)   ;;  %v1417_v20 = vld [vmem:[%s1695_s1 + $0x68] sm:$0xff] (!%p192_p3)  }
   0xb   : > { %1282 = vmatprep.subr.bf16.mxu1 (!%p192_p3), %v1402_v5  ;;  %v1410_v13 = vld [vmem:[%s1695_s1 + $0xd8] sm:$0xff] (!%p192_p3)   ;;  %v1414_v17 = vld [vmem:[%s1695_s1 + $0xe0] sm:$0xff] (!%p192_p3)   ;;  %v1418_v21 = vld [vmem:[%s1695_s1 + $0xe8] sm:$0xff] (!%p192_p3)  }
   0xc   : > { %v1411_v14 = vld [vmem:[%s1695_s1 + $0x18] sm:$0xff] (!%p192_p3)   ;;  %v1415_v18 = vld [vmem:[%s1695_s1 + $0x20] sm:$0xff] (!%p192_p3)   ;;  %v1419_v22 = vld [vmem:[%s1695_s1 + $0x28] sm:$0xff] (!%p192_p3)  }
   0xd   : > { %1243 = vmatpush3.bf16.msra.mxu0 (!%p192_p3), %v1403_v6  ;;  %v1412_v15 = vld [vmem:[%s1695_s1 + $0x98] sm:$0xff] (!%p192_p3)   ;;  %v1416_v19 = vld [vmem:[%s1695_s1 + $0xa0] sm:$0xff] (!%p192_p3)   ;;  %v1420_v23 = vld [vmem:[%s1695_s1 + $0xa8] sm:$0xff] (!%p192_p3)  }
   0xe   : > { %1283 = vmatpush3.bf16.msra.mxu1 %v1404_v7  ;;  %1244 = vmatprep.subr.bf16.mxu0 %v1405_v8  ;;  %s1703_s23 = smov (!%p236_p4, %s1134_s23), 15  ;;  %v1421_v24 = vld [vmem:[%s1695_s1 + $0x70] sm:$0xff]   ;;  %v1425_v28 = vld [vmem:[%s1695_s1 + $0x78] sm:$0xff]   ;;  %v1435_v36 = vld [vmem:[%s1695_s1 + $0x100] sm:$0xff]  }
   0xf   : > { %1284 = vmatprep.subr.bf16.mxu1 %v1406_v9  ;;  %v1422_v25 = vld [vmem:[%s1695_s1 + $0xf0] sm:$0xff]   ;;  %s1372_s22 = smul.u32 20, %s1703_s23  ;;  %v1426_v29 = vld [vmem:[%s1695_s1 + $0xf8] sm:$0xff]   ;;  %v1436_v37 = vld [vmem:[%s1695_s1 + $0x108] sm:$0xff]  }
  0x10   : > { %v1423_v26 = vld [vmem:[%s1695_s1 + $0x30] sm:$0xff]   ;;  %v1427_v30 = vld [vmem:[%s1695_s1 + $0x38] sm:$0xff]   ;;  %v1451_v46 = vld [vmem:[%s1695_s1 + $0x120] sm:$0xff]  }
  0x11   : > { %1245 = vmatpush3.bf16.msra.mxu0 %v1407_v10  ;;  %v1424_v27 = vld [vmem:[%s1695_s1 + $0xb0] sm:$0xff]   ;;  %s1626_s6 = scalar_lea.vmem %s1694_s0, %s1372_s22  ;;  %v1428_v31 = vld [vmem:[%s1695_s1 + $0xb8] sm:$0xff]   ;;  %v1452_v51 = vld [vmem:[%s1695_s1 + $0x128] sm:$0xff]  }
  0x12   : > { %1285 = vmatpush3.bf16.msra.mxu1 %v1408_v11  ;;  %1246 = vmatprep.subr.bf16.mxu0 %v1409_v12  ;;  %v1429_v32 = vld [vmem:[%s1626_s6] ss:$20 sps:$4 sm:$0xff]   ;;  %v1431_v33 = vld [vmem:[%s1626_s6 + $0x4] ss:$20 sps:$4 sm:$0xff]   ;;  %v1432_v34 = vld [vmem:[%s1626_s6 + $0x8] ss:$20 sps:$4 sm:$0xff]  }
  0x13   : > { %1286 = vmatprep.subr.bf16.mxu1 %v1410_v13  ;;  %v1434_v35 = vld [vmem:[%s1626_s6 + $0xc] ss:$20 sps:$4 sm:$0xff]   ;;  %775 = vmatprep.mubr.bf16.mxu0 %v1431_v33  ;;  %v1439_v39 = vld [vmem:[%s1626_s6 + $0x34] ss:$20 sps:$4 sm:$0xff]   ;;  %v1442_v42 = vld [vmem:[%s1626_s6 + $0x30] ss:$20 sps:$4 sm:$0xff]  }
  0x14   : > { %840 = vmatprep.mubr.bf16.mxu1 %v1434_v35  ;;  %v1437_v38 = vld [vmem:[%s1626_s6 + $0x2c] ss:$20 sps:$4 sm:$0xff]   ;;  %v1441_v40 = vld [vmem:[%s1626_s6 + $0x28] ss:$20 sps:$4 sm:$0xff]   ;;  %v1443_v41 = vld [vmem:[%s1695_s1 + $0x110] sm:$0xff]  }
  0x15   : > { %1247 = vmatpush3.bf16.msra.mxu0 %v1411_v14  ;;  %v1445_v43 = vld [vmem:[%s1626_s6 + $0x54] ss:$20 sps:$4 sm:$0xff]   ;;  %v1444_v44 = vld [vmem:[%s1695_s1 + $0x118] sm:$0xff]   ;;  %v1449_v47 = vld [vmem:[%s1626_s6 + $0x50] ss:$20 sps:$4 sm:$0xff]  }
  0x16   : > { %1287 = vmatpush3.bf16.msra.mxu1 %v1412_v15  ;;  %1248 = vmatprep.subr.bf16.mxu0 %v1413_v16  ;;  %v1447_v45 = vld [vmem:[%s1626_s6 + $0x5c] ss:$20 sps:$4 sm:$0xff]   ;;  %v1450_v48 = vld [vmem:[%s1626_s6 + $0x58] ss:$20 sps:$4 sm:$0xff]   ;;  %v1458_v54 = vld [vmem:[%s1626_s6 + $0x80] ss:$20 sps:$4 sm:$0xff]  }
  0x17   : > { %1288 = vmatprep.subr.bf16.mxu1 %v1414_v17  ;;  %v1453_v49 = vld [vmem:[%s1626_s6 + $0x7c] ss:$20 sps:$4 sm:$0xff]   ;;  %v1455_v50 = vld [vmem:[%s1626_s6 + $0x84] ss:$20 sps:$4 sm:$0xff]   ;;  %v1462_v56 = vld [vmem:[%s1626_s6 + $0x60] ss:$20 sps:$4 sm:$0xff]  }
  0x18   : > { %v1459_v52 = vld [vmem:[%s1695_s1 + $0x130] sm:$0xff]   ;;  %v1457_v53 = vld [vmem:[%s1626_s6 + $0x78] ss:$20 sps:$4 sm:$0xff]   ;;  %v1464_v59 = vld [vmem:[%s1626_s6 + $0x88] ss:$20 sps:$4 sm:$0xff]  }
  0x19   : > { %1249 = vmatpush3.bf16.msra.mxu0 %v1415_v18  ;;  %v1461_v55 = vld [vmem:[%s1626_s6 + $0x10] ss:$20 sps:$4 sm:$0xff]   ;;  %v1460_v57 = vld [vmem:[%s1695_s1 + $0x138] sm:$0xff]  }
  0x1a   : > { %1289 = vmatpush3.bf16.msra.mxu1 %v1416_v19  ;;  %1250 = vmatprep.subr.bf16.mxu0 %v1417_v20  ;;  %v1463_v58 = vld [vmem:[%s1626_s6 + $0x38] ss:$20 sps:$4 sm:$0xff]   ;;  %s1137_s6 = sshll.u32 %s1703_s23, 2 }
  0x1b   : > { %1290 = vmatprep.subr.bf16.mxu1 %v1418_v21  ;;  %s265_s9 = scalar_lea.vmem %s1697_s3, %s1137_s6 }
  0x1d   : > { %1251 = vmatpush3.bf16.msra.mxu0 %v1419_v22 }
  0x1e   : > { %1291 = vmatpush3.bf16.msra.mxu1 %v1420_v23  ;;  %1252 = vmatprep.subr.bf16.mxu0 %v1421_v24 }
  0x1f   : > { %1292 = vmatprep.subr.bf16.mxu1 %v1422_v25 }
  0x21   : > { %1253 = vmatpush3.bf16.msra.mxu0 %v1423_v26 }
  0x22   : > { %1293 = vmatpush3.bf16.msra.mxu1 %v1424_v27  ;;  %1254 = vmatprep.subr.bf16.mxu0 %v1425_v28 }
  0x23   : > { %1294 = vmatprep.subr.bf16.mxu1 %v1426_v29 }
  0x25   : > { %1255 = vmatpush3.bf16.msra.mxu0 %v1427_v30 }
  0x26   : > { %1295 = vmatpush3.bf16.msra.mxu1 %v1428_v31  ;;  %1332 = vmatprep.subr.bf16.mxu0 %v1435_v36 }
  0x27   : > { %1356 = vmatprep.subr.bf16.mxu1 %v1435_v36 }
  0x28   : > { %776 = vmatmul.mubr.bf16.vlgmr.msra.gmra.mrb[0].mxu0 %v1429_v32 }
  0x29   : > { %841 = vmatmul.mubr.bf16.vlgmr.msra.gmra.mrb[0].mxu1 %v1432_v34  ;;  %1333 = vmatpush3.bf16.msra.mxu0 %v1435_v36 }
  0x2a   : > { %1364 = vmatpush3.bf16.msra.mxu1 %v1435_v36  ;;  %1334 = vmatprep.subr.bf16.mxu0 %v1436_v37 }
  0x2b   : > { %1357 = vmatprep.subr.bf16.mxu1 %v1436_v37  ;;  %783 = vmatprep.mubr.bf16.mxu0 %v1437_v38 }
  0x2c   : > { %848 = vmatprep.mubr.bf16.mxu1 %v1439_v39 }
  0x2d   : > { %1335 = vmatpush3.bf16.msra.mxu0 %v1436_v37 }
  0x2e   : > { %1365 = vmatpush3.bf16.msra.mxu1 %v1436_v37  ;;  %1336 = vmatprep.subr.bf16.mxu0 %v1443_v41 }
  0x2f   : > { %1358 = vmatprep.subr.bf16.mxu1 %v1443_v41 }
  0x30   : > { %784 = vmatmul.mubr.bf16.gmra.mrb[4].mxu0 %v1441_v40 }
  0x31   : > { %849 = vmatmul.mubr.bf16.gmra.mrb[4].mxu1 %v1442_v42  ;;  %791 = vmatprep.mubr.bf16.mxu0 %v1445_v43 }
  0x32   : > { %1337 = vmatpush3.bf16.msra.mxu0 %v1443_v41  ;;  %856 = vmatprep.mubr.bf16.mxu1 %v1447_v45 }
  0x33   : > { %1366 = vmatpush3.bf16.msra.mxu1 %v1443_v41  ;;  %1338 = vmatprep.subr.bf16.mxu0 %v1444_v44 }
  0x34   : > { %1359 = vmatprep.subr.bf16.mxu1 %v1444_v44 }
  0x36   : > { %1339 = vmatpush3.bf16.msra.mxu0 %v1444_v44 }
  0x37   : > { %1367 = vmatpush3.bf16.msra.mxu1 %v1444_v44  ;;  %1340 = vmatprep.subr.bf16.mxu0 %v1451_v46 }
  0x38   : > { %792 = vmatmul.mubr.bf16.gmra.mrb[8].mxu0 %v1449_v47  ;;  %1360 = vmatprep.subr.bf16.mxu1 %v1451_v46 }
  0x39   : > { %857 = vmatmul.mubr.bf16.gmra.mrb[8].mxu1 %v1450_v48  ;;  %799 = vmatprep.mubr.bf16.mxu0 %v1453_v49 }
  0x3a   : > { %1341 = vmatpush3.bf16.msra.mxu0 %v1451_v46  ;;  %864 = vmatprep.mubr.bf16.mxu1 %v1455_v50 }
  0x3b   : > { %1368 = vmatpush3.bf16.msra.mxu1 %v1451_v46  ;;  %1342 = vmatprep.subr.bf16.mxu0 %v1452_v51 }
  0x3c   : > { %1361 = vmatprep.subr.bf16.mxu1 %v1452_v51 }
  0x3e   : > { %1343 = vmatpush3.bf16.msra.mxu0 %v1452_v51 }
  0x3f   : > { %1369 = vmatpush3.bf16.msra.mxu1 %v1452_v51  ;;  %1344 = vmatprep.subr.bf16.mxu0 %v1459_v52 }
  0x40   : > { %800 = vmatmul.mubr.bf16.gmra.mrb[12].mxu0 %v1457_v53  ;;  %1362 = vmatprep.subr.bf16.mxu1 %v1459_v52 }
  0x41   : > { %865 = vmatmul.mubr.bf16.gmra.mrb[12].mxu1 %v1458_v54  ;;  %1348 = vmatprep.mubr.bf16.mxu0 %v1461_v55 }
  0x42   : > { %1345 = vmatpush3.bf16.msra.mxu0 %v1459_v52  ;;  %1352 = vmatprep.mubr.bf16.mxu1 %v1462_v56 }
  0x43   : > { %1370 = vmatpush3.bf16.msra.mxu1 %v1459_v52  ;;  %1346 = vmatprep.subr.bf16.mxu0 %v1460_v57  ;;  %v1138_v52 = vld [vmem:[%s1696_s2] ss:$0 sm:$0xff] }
  0x44   : > { %1363 = vmatprep.subr.bf16.mxu1 %v1460_v57 }
  0x46   : > { %1347 = vmatpush3.bf16.msra.mxu0 %v1460_v57 }
  0x47   : > { %1371 = vmatpush3.bf16.msra.mxu1 %v1460_v57 }
  0x49   : > { %1349 = vmatmul.mubr.bf16.vlgmr.msra.gmra.mrb[16].mxu0 %v1463_v58 }
  0x4a   : > { %1353 = vmatmul.mubr.bf16.vlgmr.msra.gmra.mrb[16].mxu1 %v1464_v59 }
  0xfb   : > { %v1256_v60 = vpop.f32.mrb[0].mxu0 }
  0xfc   : > { %v1296_v61 = vpop.f32.mrb[0].mxu1  ;;  %v1257_v62 = vpop.f32.mrb[1].mxu0 }
  0xfd   : > { %v1258_v63 = vadd.f32 %v1257_v62, %v1256_v60  ;;  %v1297_v0 = vpop.f32.mrb[1].mxu1  ;;  %v1259_v1 = vpop.f32.mrb[2].mxu0 }
  0xfe   : > { %v1298_v2 = vadd.f32 %v1297_v0, %v1296_v61  ;;  %v1299_v3 = vpop.f32.mrb[2].mxu1  ;;  %v1260_v4 = vpop.f32.mrb[3].mxu0 }
  0xff   : > { %v1261_v5 = vadd.f32 %v1260_v4, %v1259_v1  ;;  %v1300_v6 = vpop.f32.mrb[3].mxu1 }
 0x100   : > { %v1301_v7 = vadd.f32 %v1300_v6, %v1299_v3  ;;  %v843_v8 = vadd.f32 %v1298_v2, %v1258_v63 }
 0x102   : > { %v846_v9 = vadd.f32 %v1301_v7, %v1261_v5 }
 0x103   : > { %v1262_v10 = vpop.f32.mrb[4].mxu0 }
 0x104   : > { %v1302_v11 = vpop.f32.mrb[4].mxu1  ;;  %v1263_v12 = vpop.f32.mrb[5].mxu0 }
 0x105   : > { %v1264_v13 = vadd.f32 %v1263_v12, %v1262_v10  ;;  %v1303_v14 = vpop.f32.mrb[5].mxu1  ;;  %v1265_v15 = vpop.f32.mrb[6].mxu0 }
 0x106   : > { %v1304_v16 = vadd.f32 %v1303_v14, %v1302_v11  ;;  %v1305_v17 = vpop.f32.mrb[6].mxu1  ;;  %v1266_v18 = vpop.f32.mrb[7].mxu0 }
 0x107   : > { %v1267_v19 = vadd.f32 %v1266_v18, %v1265_v15  ;;  %v1306_v20 = vpop.f32.mrb[7].mxu1 }
 0x108   : > { %v1307_v21 = vadd.f32 %v1306_v20, %v1305_v17  ;;  %v851_v22 = vadd.f32 %v1304_v16, %v1264_v13 }
 0x10a   : > { %v854_v23 = vadd.f32 %v1307_v21, %v1267_v19 }
 0x10b   : > { %v1268_v24 = vpop.f32.mrb[8].mxu0 }
 0x10c   : > { %v1308_v25 = vpop.f32.mrb[8].mxu1  ;;  %v1269_v26 = vpop.f32.mrb[9].mxu0 }
 0x10d   : > { %v1270_v27 = vadd.f32 %v1269_v26, %v1268_v24  ;;  %v1309_v28 = vpop.f32.mrb[9].mxu1  ;;  %v1271_v29 = vpop.f32.mrb[10].mxu0 }
 0x10e   : > { %v1310_v30 = vadd.f32 %v1309_v28, %v1308_v25  ;;  %v1311_v31 = vpop.f32.mrb[10].mxu1  ;;  %v1272_v32 = vpop.f32.mrb[11].mxu0 }
 0x10f   : > { %v1273_v33 = vadd.f32 %v1272_v32, %v1271_v29  ;;  %v1312_v34 = vpop.f32.mrb[11].mxu1 }
 0x110   : > { %v1313_v35 = vadd.f32 %v1312_v34, %v1311_v31  ;;  %v859_v36 = vadd.f32 %v1310_v30, %v1270_v27 }
 0x112   : > { %v862_v37 = vadd.f32 %v1313_v35, %v1273_v33 }
 0x113   : > { %v1274_v38 = vpop.f32.mrb[12].mxu0 }
 0x114   : > { %v1314_v39 = vpop.f32.mrb[12].mxu1  ;;  %v1275_v40 = vpop.f32.mrb[13].mxu0 }
 0x115   : > { %v1276_v41 = vadd.f32 %v1275_v40, %v1274_v38  ;;  %v1315_v42 = vpop.f32.mrb[13].mxu1  ;;  %v1277_v43 = vpop.f32.mrb[14].mxu0 }
 0x116   : > { %v1316_v44 = vadd.f32 %v1315_v42, %v1314_v39  ;;  %v1317_v45 = vpop.f32.mrb[14].mxu1  ;;  %v1278_v46 = vpop.f32.mrb[15].mxu0 }
 0x117   : > { %v1279_v47 = vadd.f32 %v1278_v46, %v1277_v43  ;;  %v1318_v48 = vpop.f32.mrb[15].mxu1 }
 0x118   : > { %v1319_v49 = vadd.f32 %v1318_v48, %v1317_v45  ;;  %v867_v50 = vadd.f32 %v1316_v44, %v1276_v41 }
 0x11a   : > { %v870_v51 = vadd.f32 %v1319_v49, %v1279_v47 }
 0x11c   : > { %v1350_v53 = vpop.f32.mrb[16].mxu0 }
 0x11d   : > { %v916_v54 = vadd.f32 %v1350_v53, %v851_v22  ;;  %v1354_v55 = vpop.f32.mrb[16].mxu1  ;;  %v907_v56 = vpop.f32.mrb[17].mxu0 }
 0x11e   : > { %v932_v57 = vadd.f32 %v1354_v55, %v867_v50  ;;  %v908_v58 = vadd.f32 %v907_v56, %v843_v8  ;;  %v923_v59 = vpop.f32.mrb[17].mxu1  ;;  %v1351_v60 = vpop.f32.mrb[18].mxu0 }
 0x11f   : > { %v940_v61 = vadd.f32 %v1138_v52, %v916_v54  ;;  %v924_v62 = vadd.f32 %v923_v59, %v859_v36  ;;  %v919_v63 = vadd.f32 %v1351_v60, %v854_v23  ;;  %v1355_v0 = vpop.f32.mrb[18].mxu1  ;;  %v910_v1 = vpop.f32.mrb[19].mxu0 }
 0x120   : > { %v944_v2 = vadd.f32 %v1138_v52, %v932_v57  ;;  %v938_v3 = vadd.f32 %v1138_v52, %v908_v58  ;;  %v935_v4 = vadd.f32 %v1355_v0, %v870_v51  ;;  %v911_v5 = vadd.f32 %v910_v1, %v846_v9  ;;  %v926_v6 = vpop.f32.mrb[19].mxu1 }
 0x121   : > { %v942_v7 = vadd.f32 %v1138_v52, %v924_v62  ;;  %v941_v10 = vadd.f32 %v1138_v52, %v919_v63  ;;  %v927_v11 = vadd.f32 %v926_v6, %v862_v37  ;;  %v967_v14 = vmax.f32 %v940_v61, 0.0 }
 0x122   : > { %v945_v12 = vadd.f32 %v1138_v52, %v935_v4  ;;  %v939_v13 = vadd.f32 %v1138_v52, %v911_v5  ;;  %v971_v16 = vmax.f32 %v944_v2, 0.0  ;;  %v965_v17 = vmax.f32 %v938_v3, 0.0 }
 0x123   : > { %v968_v8 = vmax.f32 %v941_v10, 0.0  ;;  %v943_v15 = vadd.f32 %v1138_v52, %v927_v11  ;;  %v969_v20 = vmax.f32 %v942_v7, 0.0 }
 0x124   : > { %v972_v18 = vmax.f32 %v945_v12, 0.0  ;;  %v966_v19 = vmax.f32 %v939_v13, 0.0 }
 0x125   : > { %v1225_v9 = vpack.c.bf16 %v968_v8, %v967_v14  ;;  %v970_v21 = vmax.f32 %v943_v15, 0.0 }
 0x126   : > { %v1235_v22 = vpack.c.bf16 %v972_v18, %v971_v16  ;;  %v1220_v23 = vpack.c.bf16 %v966_v19, %v965_v17 }
 0x127   : > { %1237 = vst [vmem:[%s265_s9 + $0x8] sm:$0xff] %v1225_v9   ;;  %v1230_v24 = vpack.c.bf16 %v970_v21, %v969_v20 }
 0x128   : > { %1239 = vst [vmem:[%s265_s9 + $0x18] sm:$0xff] %v1235_v22   ;;  %1221 = vst [vmem:[%s265_s9] sm:$0xff] %v1220_v23  }
 0x129   : > { %1238 = vst [vmem:[%s265_s9 + $0x10] sm:$0xff] %v1230_v24  }
 0x12a PF: > { %s13_s14 = sadd.s32 1, %s1487_s14   ;;  %s1698_s12 = smov %s1483_s13 }
 0x12b   : > { %p10_p5 = scmp.ge.s32.totalorder %s13_s14, 4   ;;  %s1699_s13 = smov %s1701_s15 }
 0x12d   :  { %12 = sbr.rel (!%p10_p5) target bundleno = 2 (0x2), region = 76 }

// kernel: resnet_classifier_forward.7
= control target key start
LH: loop header
LB: loop body
LE: loop exit
PB: predicated region body
PF: predicated region fallthrough
CT: control target
= control target key end

     0   :  { %s1634_s15 = smov 0   ;;  %s1636_s16 = smov 0   ;;  %s1829_s0 = inlined_call_operand.vmem [shape: bf16[128,640], index: 0, kind: input, shape index: {}]   ;;  %s1830_s1 = inlined_call_operand.vmem [shape: bf16[640,128], index: 1, kind: input, shape index: {}]   ;;  %s1831_s2 = inlined_call_operand.vmem [shape: f32[1,128], index: 2, kind: input, shape index: {}]   ;;  %s1832_s3 = inlined_call_operand.vmem [shape: bf16[128,128], index: 3, kind: input, shape index: {}]   ;;  %s1833_s4 = inlined_call_operand.vmem [shape: bf16[128,128], index: 4, kind: output, shape index: {}]  }
   0x1   :  { %s1638_s17 = smov 0  }
   0x2 LB: > { %s33_s18 = sadd.s32 1, %s1603_s16  ;;  %p1232_p0 = scmp.ge.s32.totalorder %s1607_s17, 1  ;;  %s1607_s17 = sphi %s1638_s17, %s14_s17   ;;  %s1603_s16 = sphi %s1636_s16, %s1835_s16   ;;  %s1599_s15 = sphi %s1634_s15, %s1834_s15  }
   0x3   : > { %p35_p1 = scmp.ge.s32.totalorder %s33_s18, 2  ;;  %p232_p2 = scmp.lt.s32.totalorder %s1607_s17, 3 }
   0x5   : > { %s1837_s18 = smov (%p35_p1, %s33_s18), 0  ;;  %p233_p3 = pnand %p1232_p0, %p232_p2 }
   0x6   : > { %v1517_v0 = vld [vmem:[%s1830_s1 + $0x40] sm:$0xff] (!%p233_p3)   ;;  %v1521_v4 = vld [vmem:[%s1830_s1 + $0x48] sm:$0xff] (!%p233_p3)   ;;  %v1525_v8 = vld [vmem:[%s1830_s1 + $0x50] sm:$0xff] (!%p233_p3)   ;;  %s1233_s27 = sshll.u32 (!%p233_p3), %s1599_s15, 3 }
   0x7   : > { %236 = sbr.rel (%p233_p3) target bundleno = 300 (0x12c), region = 36  ;;  %v1518_v1 = vld [vmem:[%s1830_s1 + $0xc0] sm:$0xff] (!%p233_p3)   ;;  %1360 = vmatprep.subr.bf16.mxu0 (!%p233_p3), %v1517_v0  ;;  %v1522_v5 = vld [vmem:[%s1830_s1 + $0xc8] sm:$0xff] (!%p233_p3)   ;;  %v1526_v9 = vld [vmem:[%s1830_s1 + $0xd0] sm:$0xff] (!%p233_p3)   ;;  %p287_p4 = scmp.lt.s32.totalorder (!%p233_p3), %s1233_s27, 15 }
   0x8   : > { %v1519_v2 = vld [vmem:[%s1830_s1] sm:$0xff] (!%p233_p3)   ;;  %1400 = vmatprep.subr.bf16.mxu1 (!%p233_p3), %v1518_v1  ;;  %v1523_v6 = vld [vmem:[%s1830_s1 + $0x8] sm:$0xff] (!%p233_p3)   ;;  %v1527_v10 = vld [vmem:[%s1830_s1 + $0x10] sm:$0xff] (!%p233_p3)  }
   0x9   : > { %v1520_v3 = vld [vmem:[%s1830_s1 + $0x80] sm:$0xff] (!%p233_p3)   ;;  %1361 = vmatpush3.bf16.msra.mxu0 (!%p233_p3), %v1519_v2  ;;  %v1524_v7 = vld [vmem:[%s1830_s1 + $0x88] sm:$0xff] (!%p233_p3)   ;;  %v1528_v11 = vld [vmem:[%s1830_s1 + $0x90] sm:$0xff] (!%p233_p3)  }
   0xa   : > { %1401 = vmatpush3.bf16.msra.mxu1 (!%p233_p3), %v1520_v3  ;;  %1362 = vmatprep.subr.bf16.mxu0 (!%p233_p3), %v1521_v4  ;;  %v1529_v12 = vld [vmem:[%s1830_s1 + $0x58] sm:$0xff] (!%p233_p3)   ;;  %v1533_v16 = vld [vmem:[%s1830_s1 + $0x60] sm:$0xff] (!%p233_p3)   ;;  %v1537_v20 = vld [vmem:[%s1830_s1 + $0x68] sm:$0xff] (!%p233_p3)  }
   0xb   : > { %1402 = vmatprep.subr.bf16.mxu1 (!%p233_p3), %v1522_v5  ;;  %v1530_v13 = vld [vmem:[%s1830_s1 + $0xd8] sm:$0xff] (!%p233_p3)   ;;  %v1534_v17 = vld [vmem:[%s1830_s1 + $0xe0] sm:$0xff] (!%p233_p3)   ;;  %v1538_v21 = vld [vmem:[%s1830_s1 + $0xe8] sm:$0xff] (!%p233_p3)  }
   0xc   : > { %v1531_v14 = vld [vmem:[%s1830_s1 + $0x18] sm:$0xff] (!%p233_p3)   ;;  %v1535_v18 = vld [vmem:[%s1830_s1 + $0x20] sm:$0xff] (!%p233_p3)   ;;  %v1539_v22 = vld [vmem:[%s1830_s1 + $0x28] sm:$0xff] (!%p233_p3)  }
   0xd   : > { %1363 = vmatpush3.bf16.msra.mxu0 (!%p233_p3), %v1523_v6  ;;  %v1532_v15 = vld [vmem:[%s1830_s1 + $0x98] sm:$0xff] (!%p233_p3)   ;;  %v1536_v19 = vld [vmem:[%s1830_s1 + $0xa0] sm:$0xff] (!%p233_p3)   ;;  %v1540_v23 = vld [vmem:[%s1830_s1 + $0xa8] sm:$0xff] (!%p233_p3)  }
   0xe   : > { %1403 = vmatpush3.bf16.msra.mxu1 %v1524_v7  ;;  %1364 = vmatprep.subr.bf16.mxu0 %v1525_v8  ;;  %s1839_s27 = smov (!%p287_p4, %s1233_s27), 15  ;;  %v1541_v24 = vld [vmem:[%s1830_s1 + $0x70] sm:$0xff]   ;;  %v1545_v28 = vld [vmem:[%s1830_s1 + $0x78] sm:$0xff]   ;;  %v1555_v36 = vld [vmem:[%s1830_s1 + $0x100] sm:$0xff]  }
   0xf   : > { %1404 = vmatprep.subr.bf16.mxu1 %v1526_v9  ;;  %v1542_v25 = vld [vmem:[%s1830_s1 + $0xf0] sm:$0xff]   ;;  %s1492_s28 = smul.u32 20, %s1839_s27  ;;  %v1546_v29 = vld [vmem:[%s1830_s1 + $0xf8] sm:$0xff]   ;;  %v1556_v37 = vld [vmem:[%s1830_s1 + $0x108] sm:$0xff]   ;;  %s1236_s11 = sshll.u32 %s1839_s27, 2 }
  0x10   : > { %v1543_v26 = vld [vmem:[%s1830_s1 + $0x30] sm:$0xff]   ;;  %v1547_v30 = vld [vmem:[%s1830_s1 + $0x38] sm:$0xff]   ;;  %v1571_v46 = vld [vmem:[%s1830_s1 + $0x120] sm:$0xff]   ;;  %s316_s14 = scalar_lea.vmem %s1832_s3, %s1236_s11  ;;  %s325_s23 = scalar_lea.vmem %s1833_s4, %s1236_s11 }
  0x11   : > { %1365 = vmatpush3.bf16.msra.mxu0 %v1527_v10  ;;  %v1544_v27 = vld [vmem:[%s1830_s1 + $0xb0] sm:$0xff]   ;;  %s1751_s12 = scalar_lea.vmem %s1829_s0, %s1492_s28  ;;  %v1548_v31 = vld [vmem:[%s1830_s1 + $0xb8] sm:$0xff]   ;;  %v1572_v51 = vld [vmem:[%s1830_s1 + $0x128] sm:$0xff]  }
  0x12   : > { %1405 = vmatpush3.bf16.msra.mxu1 %v1528_v11  ;;  %1366 = vmatprep.subr.bf16.mxu0 %v1529_v12  ;;  %v1549_v32 = vld [vmem:[%s1751_s12] ss:$20 sps:$4 sm:$0xff]   ;;  %v1551_v33 = vld [vmem:[%s1751_s12 + $0x4] ss:$20 sps:$4 sm:$0xff]   ;;  %v1552_v34 = vld [vmem:[%s1751_s12 + $0x8] ss:$20 sps:$4 sm:$0xff]  }
  0x13   : > { %1406 = vmatprep.subr.bf16.mxu1 %v1530_v13  ;;  %v1554_v35 = vld [vmem:[%s1751_s12 + $0xc] ss:$20 sps:$4 sm:$0xff]   ;;  %835 = vmatprep.mubr.bf16.mxu0 %v1551_v33  ;;  %v1559_v39 = vld [vmem:[%s1751_s12 + $0x34] ss:$20 sps:$4 sm:$0xff]   ;;  %v1562_v42 = vld [vmem:[%s1751_s12 + $0x30] ss:$20 sps:$4 sm:$0xff]  }
  0x14   : > { %900 = vmatprep.mubr.bf16.mxu1 %v1554_v35  ;;  %v1557_v38 = vld [vmem:[%s1751_s12 + $0x2c] ss:$20 sps:$4 sm:$0xff]   ;;  %v1561_v40 = vld [vmem:[%s1751_s12 + $0x28] ss:$20 sps:$4 sm:$0xff]   ;;  %v1563_v41 = vld [vmem:[%s1830_s1 + $0x110] sm:$0xff]  }
  0x15   : > { %1367 = vmatpush3.bf16.msra.mxu0 %v1531_v14  ;;  %v1565_v43 = vld [vmem:[%s1751_s12 + $0x54] ss:$20 sps:$4 sm:$0xff]   ;;  %v1564_v44 = vld [vmem:[%s1830_s1 + $0x118] sm:$0xff]   ;;  %v1569_v47 = vld [vmem:[%s1751_s12 + $0x50] ss:$20 sps:$4 sm:$0xff]  }
  0x16   : > { %1407 = vmatpush3.bf16.msra.mxu1 %v1532_v15  ;;  %1368 = vmatprep.subr.bf16.mxu0 %v1533_v16  ;;  %v1567_v45 = vld [vmem:[%s1751_s12 + $0x5c] ss:$20 sps:$4 sm:$0xff]   ;;  %v1570_v48 = vld [vmem:[%s1751_s12 + $0x58] ss:$20 sps:$4 sm:$0xff]   ;;  %v1578_v54 = vld [vmem:[%s1751_s12 + $0x80] ss:$20 sps:$4 sm:$0xff]  }
  0x17   : > { %1408 = vmatprep.subr.bf16.mxu1 %v1534_v17  ;;  %v1573_v49 = vld [vmem:[%s1751_s12 + $0x7c] ss:$20 sps:$4 sm:$0xff]   ;;  %v1575_v50 = vld [vmem:[%s1751_s12 + $0x84] ss:$20 sps:$4 sm:$0xff]   ;;  %v1582_v56 = vld [vmem:[%s1751_s12 + $0x60] ss:$20 sps:$4 sm:$0xff]  }
  0x18   : > { %v1579_v52 = vld [vmem:[%s1830_s1 + $0x130] sm:$0xff]   ;;  %v1577_v53 = vld [vmem:[%s1751_s12 + $0x78] ss:$20 sps:$4 sm:$0xff]   ;;  %v1584_v59 = vld [vmem:[%s1751_s12 + $0x88] ss:$20 sps:$4 sm:$0xff]  }
  0x19   : > { %1369 = vmatpush3.bf16.msra.mxu0 %v1535_v18  ;;  %v1581_v55 = vld [vmem:[%s1751_s12 + $0x10] ss:$20 sps:$4 sm:$0xff]   ;;  %v1580_v57 = vld [vmem:[%s1830_s1 + $0x138] sm:$0xff]  }
  0x1a   : > { %1409 = vmatpush3.bf16.msra.mxu1 %v1536_v19  ;;  %1370 = vmatprep.subr.bf16.mxu0 %v1537_v20  ;;  %v1583_v58 = vld [vmem:[%s1751_s12 + $0x38] ss:$20 sps:$4 sm:$0xff]  }
  0x1b   : > { %1410 = vmatprep.subr.bf16.mxu1 %v1538_v21 }
  0x1d   : > { %1371 = vmatpush3.bf16.msra.mxu0 %v1539_v22 }
  0x1e   : > { %1411 = vmatpush3.bf16.msra.mxu1 %v1540_v23  ;;  %1372 = vmatprep.subr.bf16.mxu0 %v1541_v24 }
  0x1f   : > { %1412 = vmatprep.subr.bf16.mxu1 %v1542_v25 }
  0x21   : > { %1373 = vmatpush3.bf16.msra.mxu0 %v1543_v26 }
  0x22   : > { %1413 = vmatpush3.bf16.msra.mxu1 %v1544_v27  ;;  %1374 = vmatprep.subr.bf16.mxu0 %v1545_v28 }
  0x23   : > { %1414 = vmatprep.subr.bf16.mxu1 %v1546_v29 }
  0x25   : > { %1375 = vmatpush3.bf16.msra.mxu0 %v1547_v30 }
  0x26   : > { %1415 = vmatpush3.bf16.msra.mxu1 %v1548_v31  ;;  %1452 = vmatprep.subr.bf16.mxu0 %v1555_v36 }
  0x27   : > { %1476 = vmatprep.subr.bf16.mxu1 %v1555_v36 }
  0x28   : > { %836 = vmatmul.mubr.bf16.vlgmr.msra.gmra.mrb[0].mxu0 %v1549_v32 }
  0x29   : > { %901 = vmatmul.mubr.bf16.vlgmr.msra.gmra.mrb[0].mxu1 %v1552_v34  ;;  %1453 = vmatpush3.bf16.msra.mxu0 %v1555_v36 }
  0x2a   : > { %1484 = vmatpush3.bf16.msra.mxu1 %v1555_v36  ;;  %1454 = vmatprep.subr.bf16.mxu0 %v1556_v37 }
  0x2b   : > { %1477 = vmatprep.subr.bf16.mxu1 %v1556_v37  ;;  %843 = vmatprep.mubr.bf16.mxu0 %v1557_v38 }
  0x2c   : > { %908 = vmatprep.mubr.bf16.mxu1 %v1559_v39 }
  0x2d   : > { %1455 = vmatpush3.bf16.msra.mxu0 %v1556_v37 }
  0x2e   : > { %1485 = vmatpush3.bf16.msra.mxu1 %v1556_v37  ;;  %1456 = vmatprep.subr.bf16.mxu0 %v1563_v41 }
  0x2f   : > { %1478 = vmatprep.subr.bf16.mxu1 %v1563_v41 }
  0x30   : > { %844 = vmatmul.mubr.bf16.gmra.mrb[4].mxu0 %v1561_v40 }
  0x31   : > { %909 = vmatmul.mubr.bf16.gmra.mrb[4].mxu1 %v1562_v42  ;;  %851 = vmatprep.mubr.bf16.mxu0 %v1565_v43 }
  0x32   : > { %1457 = vmatpush3.bf16.msra.mxu0 %v1563_v41  ;;  %916 = vmatprep.mubr.bf16.mxu1 %v1567_v45 }
  0x33   : > { %1486 = vmatpush3.bf16.msra.mxu1 %v1563_v41  ;;  %1458 = vmatprep.subr.bf16.mxu0 %v1564_v44 }
  0x34   : > { %1479 = vmatprep.subr.bf16.mxu1 %v1564_v44 }
  0x36   : > { %1459 = vmatpush3.bf16.msra.mxu0 %v1564_v44 }
  0x37   : > { %1487 = vmatpush3.bf16.msra.mxu1 %v1564_v44  ;;  %1460 = vmatprep.subr.bf16.mxu0 %v1571_v46 }
  0x38   : > { %852 = vmatmul.mubr.bf16.gmra.mrb[8].mxu0 %v1569_v47  ;;  %1480 = vmatprep.subr.bf16.mxu1 %v1571_v46 }
  0x39   : > { %917 = vmatmul.mubr.bf16.gmra.mrb[8].mxu1 %v1570_v48  ;;  %859 = vmatprep.mubr.bf16.mxu0 %v1573_v49 }
  0x3a   : > { %1461 = vmatpush3.bf16.msra.mxu0 %v1571_v46  ;;  %924 = vmatprep.mubr.bf16.mxu1 %v1575_v50 }
  0x3b   : > { %1488 = vmatpush3.bf16.msra.mxu1 %v1571_v46  ;;  %1462 = vmatprep.subr.bf16.mxu0 %v1572_v51 }
  0x3c   : > { %1481 = vmatprep.subr.bf16.mxu1 %v1572_v51 }
  0x3e   : > { %1463 = vmatpush3.bf16.msra.mxu0 %v1572_v51 }
  0x3f   : > { %1489 = vmatpush3.bf16.msra.mxu1 %v1572_v51  ;;  %1464 = vmatprep.subr.bf16.mxu0 %v1579_v52  ;;  %v1354_v51 = vld [vmem:[%s316_s14 + $0x8] sm:$0xff]  }
  0x40   : > { %860 = vmatmul.mubr.bf16.gmra.mrb[12].mxu0 %v1577_v53  ;;  %1482 = vmatprep.subr.bf16.mxu1 %v1579_v52  ;;  %v1319_v53 = vld [vmem:[%s316_s14] sm:$0xff]  }
  0x41   : > { %925 = vmatmul.mubr.bf16.gmra.mrb[12].mxu1 %v1578_v54  ;;  %1468 = vmatprep.mubr.bf16.mxu0 %v1581_v55  ;;  %v1355_v54 = vld [vmem:[%s316_s14 + $0x10] sm:$0xff]  }
  0x42   : > { %1465 = vmatpush3.bf16.msra.mxu0 %v1579_v52  ;;  %1472 = vmatprep.mubr.bf16.mxu1 %v1582_v56  ;;  %v1239_v56 = vld [vmem:[%s1831_s2] ss:$0 sm:$0xff] }
  0x43   : > { %1490 = vmatpush3.bf16.msra.mxu1 %v1579_v52  ;;  %1466 = vmatprep.subr.bf16.mxu0 %v1580_v57  ;;  %v1356_v52 = vld [vmem:[%s316_s14 + $0x18] sm:$0xff]  }
  0x44   : > { %1483 = vmatprep.subr.bf16.mxu1 %v1580_v57 }
  0x46   : > { %1467 = vmatpush3.bf16.msra.mxu0 %v1580_v57 }
  0x47   : > { %1491 = vmatpush3.bf16.msra.mxu1 %v1580_v57 }
  0x49   : > { %1469 = vmatmul.mubr.bf16.vlgmr.msra.gmra.mrb[16].mxu0 %v1583_v58  ;;  %v1324_v58 = vunpack.c.l.bf16 %v1354_v51 }
  0x4a   : > { %1473 = vmatmul.mubr.bf16.vlgmr.msra.gmra.mrb[16].mxu1 %v1584_v59  ;;  %v1332_v59 = vunpack.c.l.bf16 %v1356_v52 }
  0xfb   : > { %v1376_v60 = vpop.f32.mrb[0].mxu0 }
  0xfc   : > { %v1416_v61 = vpop.f32.mrb[0].mxu1  ;;  %v1377_v62 = vpop.f32.mrb[1].mxu0 }
  0xfd   : > { %v1378_v63 = vadd.f32 %v1377_v62, %v1376_v60  ;;  %v1417_v0 = vpop.f32.mrb[1].mxu1  ;;  %v1379_v1 = vpop.f32.mrb[2].mxu0 }
  0xfe   : > { %v1418_v2 = vadd.f32 %v1417_v0, %v1416_v61  ;;  %v1419_v3 = vpop.f32.mrb[2].mxu1  ;;  %v1380_v4 = vpop.f32.mrb[3].mxu0  ;;  %v1328_v0 = vunpack.c.l.bf16 %v1355_v54 }
  0xff   : > { %v1381_v5 = vadd.f32 %v1380_v4, %v1379_v1  ;;  %v1420_v6 = vpop.f32.mrb[3].mxu1  ;;  %v1325_v1 = vunpack.c.h.bf16 %v1354_v51 }
 0x100   : > { %v1421_v7 = vadd.f32 %v1420_v6, %v1419_v3  ;;  %v903_v8 = vadd.f32 %v1418_v2, %v1378_v63  ;;  %v1320_v63 = vunpack.c.l.bf16 %v1319_v53  ;;  %v1333_v6 = vunpack.c.h.bf16 %v1356_v52 }
 0x102   : > { %v1803_v9 = vadd.f32 %v1421_v7, %v1381_v5  ;;  %v1321_v7 = vunpack.c.h.bf16 %v1319_v53 }
 0x103   : > { %v1382_v10 = vpop.f32.mrb[4].mxu0 }
 0x104   : > { %v1422_v11 = vpop.f32.mrb[4].mxu1  ;;  %v1383_v12 = vpop.f32.mrb[5].mxu0 }
 0x105   : > { %v1384_v13 = vadd.f32 %v1383_v12, %v1382_v10  ;;  %v1423_v14 = vpop.f32.mrb[5].mxu1  ;;  %v1385_v15 = vpop.f32.mrb[6].mxu0 }
 0x106   : > { %v1424_v16 = vadd.f32 %v1423_v14, %v1422_v11  ;;  %v1425_v17 = vpop.f32.mrb[6].mxu1  ;;  %v1386_v18 = vpop.f32.mrb[7].mxu0 }
 0x107   : > { %v1387_v19 = vadd.f32 %v1386_v18, %v1385_v15  ;;  %v1426_v20 = vpop.f32.mrb[7].mxu1  ;;  %v1329_v15 = vunpack.c.h.bf16 %v1355_v54 }
 0x108   : > { %v1427_v21 = vadd.f32 %v1426_v20, %v1425_v17  ;;  %v911_v22 = vadd.f32 %v1424_v16, %v1384_v13 }
 0x10a   : > { %v914_v23 = vadd.f32 %v1427_v21, %v1387_v19 }
 0x10b   : > { %v1388_v24 = vpop.f32.mrb[8].mxu0 }
 0x10c   : > { %v1428_v25 = vpop.f32.mrb[8].mxu1  ;;  %v1389_v26 = vpop.f32.mrb[9].mxu0 }
 0x10d   : > { %v1390_v27 = vadd.f32 %v1389_v26, %v1388_v24  ;;  %v1429_v28 = vpop.f32.mrb[9].mxu1  ;;  %v1391_v29 = vpop.f32.mrb[10].mxu0 }
 0x10e   : > { %v1430_v30 = vadd.f32 %v1429_v28, %v1428_v25  ;;  %v1431_v31 = vpop.f32.mrb[10].mxu1  ;;  %v1392_v32 = vpop.f32.mrb[11].mxu0 }
 0x10f   : > { %v1393_v33 = vadd.f32 %v1392_v32, %v1391_v29  ;;  %v1432_v34 = vpop.f32.mrb[11].mxu1 }
 0x110   : > { %v1433_v35 = vadd.f32 %v1432_v34, %v1431_v31  ;;  %v919_v36 = vadd.f32 %v1430_v30, %v1390_v27 }
 0x112   : > { %v922_v37 = vadd.f32 %v1433_v35, %v1393_v33 }
 0x113   : > { %v1394_v38 = vpop.f32.mrb[12].mxu0 }
 0x114   : > { %v1434_v39 = vpop.f32.mrb[12].mxu1  ;;  %v1395_v40 = vpop.f32.mrb[13].mxu0 }
 0x115   : > { %v1396_v41 = vadd.f32 %v1395_v40, %v1394_v38  ;;  %v1435_v42 = vpop.f32.mrb[13].mxu1  ;;  %v1397_v43 = vpop.f32.mrb[14].mxu0 }
 0x116   : > { %v1436_v44 = vadd.f32 %v1435_v42, %v1434_v39  ;;  %v1437_v45 = vpop.f32.mrb[14].mxu1  ;;  %v1398_v46 = vpop.f32.mrb[15].mxu0 }
 0x117   : > { %v1399_v47 = vadd.f32 %v1398_v46, %v1397_v43  ;;  %v1438_v48 = vpop.f32.mrb[15].mxu1 }
 0x118   : > { %v1439_v49 = vadd.f32 %v1438_v48, %v1437_v45  ;;  %v927_v50 = vadd.f32 %v1436_v44, %v1396_v41 }
 0x11a   : > { %v930_v55 = vadd.f32 %v1439_v49, %v1399_v47 }
 0x11c   : > { %v1470_v57 = vpop.f32.mrb[16].mxu0 }
 0x11d   : > { %v976_v60 = vadd.f32 %v1470_v57, %v911_v22  ;;  %v1474_v61 = vpop.f32.mrb[16].mxu1  ;;  %v967_v62 = vpop.f32.mrb[17].mxu0 }
 0x11e   : > { %v992_v2 = vadd.f32 %v1474_v61, %v927_v50  ;;  %v968_v3 = vadd.f32 %v967_v62, %v903_v8  ;;  %v983_v4 = vpop.f32.mrb[17].mxu1  ;;  %v1471_v5 = vpop.f32.mrb[18].mxu0 }
 0x11f   : > { %v1000_v10 = vadd.f32 %v1239_v56, %v976_v60  ;;  %v984_v11 = vadd.f32 %v983_v4, %v919_v36  ;;  %v979_v12 = vadd.f32 %v1471_v5, %v914_v23  ;;  %v1475_v13 = vpop.f32.mrb[18].mxu1  ;;  %v970_v14 = vpop.f32.mrb[19].mxu0 }
 0x120   : > { %v1004_v16 = vadd.f32 %v1239_v56, %v992_v2  ;;  %v998_v17 = vadd.f32 %v1239_v56, %v968_v3  ;;  %v995_v18 = vadd.f32 %v1475_v13, %v930_v55  ;;  %v971_v19 = vadd.f32 %v970_v14, %v1803_v9  ;;  %v986_v20 = vpop.f32.mrb[19].mxu1 }
 0x121   : > { %v1043_v21 = vadd.f32 %v1324_v58, %v1000_v10  ;;  %v1002_v22 = vadd.f32 %v1239_v56, %v984_v11  ;;  %v1001_v24 = vadd.f32 %v1239_v56, %v979_v12  ;;  %v987_v8 = vadd.f32 %v986_v20, %v922_v37 }
 0x122   : > { %v1047_v25 = vadd.f32 %v1332_v59, %v1004_v16  ;;  %v1041_v26 = vadd.f32 %v1320_v63, %v998_v17  ;;  %v1005_v27 = vadd.f32 %v1239_v56, %v995_v18  ;;  %v999_v28 = vadd.f32 %v1239_v56, %v971_v19 }
 0x123   : > { %v1045_v29 = vadd.f32 %v1328_v0, %v1002_v22  ;;  %v1044_v23 = vadd.f32 %v1325_v1, %v1001_v24  ;;  %v1003_v30 = vadd.f32 %v1239_v56, %v987_v8  ;;  %v1051_v33 = vmax.f32 %v1043_v21, 0.0 }
 0x124   : > { %v1048_v31 = vadd.f32 %v1333_v6, %v1005_v27  ;;  %v1042_v32 = vadd.f32 %v1321_v7, %v999_v28  ;;  %v1055_v36 = vmax.f32 %v1047_v25, 0.0  ;;  %v1049_v9 = vmax.f32 %v1041_v26, 0.0 }
 0x125   : > { %v1052_v34 = vmax.f32 %v1044_v23, 0.0  ;;  %v1046_v35 = vadd.f32 %v1329_v15, %v1003_v30  ;;  %v1053_v39 = vmax.f32 %v1045_v29, 0.0 }
 0x126   : > { %v1056_v37 = vmax.f32 %v1048_v31, 0.0  ;;  %v1050_v38 = vmax.f32 %v1042_v32, 0.0 }
 0x127   : > { %v1342_v40 = vpack.c.bf16 %v1052_v34, %v1051_v33  ;;  %v1054_v41 = vmax.f32 %v1046_v35, 0.0 }
 0x128   : > { %v1352_v42 = vpack.c.bf16 %v1056_v37, %v1055_v36  ;;  %v1337_v43 = vpack.c.bf16 %v1050_v38, %v1049_v9 }
 0x129   : > { %1357 = vst [vmem:[%s325_s23 + $0x8] sm:$0xff] %v1342_v40   ;;  %v1347_v44 = vpack.c.bf16 %v1054_v41, %v1053_v39 }
 0x12a   : > { %1359 = vst [vmem:[%s325_s23 + $0x18] sm:$0xff] %v1352_v42   ;;  %1338 = vst [vmem:[%s325_s23] sm:$0xff] %v1337_v43  }
 0x12b   : > { %1358 = vst [vmem:[%s325_s23 + $0x10] sm:$0xff] %v1347_v44  }
 0x12c PF: > { %s14_s17 = sadd.s32 1, %s1607_s17   ;;  %s1834_s15 = smov %s1603_s16 }
 0x12d   : > { %p11_p5 = scmp.ge.s32.totalorder %s14_s17, 4   ;;  %s1835_s16 = smov %s1837_s18 }
 0x12f   :  { %13 = sbr.rel (!%p11_p5) target bundleno = 2 (0x2), region = 83 }

</bundles_post_ra>
